<compile_context>
chip_gen: v5e
topology: v5e:2x2
jax: 0.10.0
libtpu: 0.0.40
codegen_flags: <defaults>
</compile_context>

<pallas_src>
import functools

import jax
import jax.numpy as jnp
from jax.experimental import pallas as pl
from jax.experimental.pallas import tpu as pltpu


def _transformer_stack_kernel(
    x_ref,                     # (bb, N, D) input activation block
    g1_ref, be1_ref,           # AdaIN #1 affine, block (1, 1, D)  f32
    wqkv_ref,                  # (1, 3*heads, D, dh)               bf16
    wo_ref, bo_ref,            # (1, heads, dh, D) bf16, (1, 1, D) f32
    g2_ref, be2_ref,           # AdaIN #2 affine, block (1, 1, D)  f32
    w1_ref, bb1_ref,           # (1, D, mlp) bf16, (1, 1, mlp)     f32
    w2_ref, bb2_ref,           # (1, mlp, D) bf16, (1, 1, D)       f32
    o_ref,                     # (bb, N, D) output block
    acc_ref,                   # VMEM scratch (bb, N, D) f32 — activation carried across layers
    *, heads, dim_head, scale, eps,
):
    layer = pl.program_id(1)
    depth = pl.num_programs(1)

    # Load the input activation once (first layer of this batch chunk).
    @pl.when(layer == 0)
    def _():
        acc_ref[...] = x_ref[...].astype(jnp.float32)

    x = acc_ref[...]                                  # (bb, N, D) f32
    bb, N, D = x.shape

    def adain(t, g_ref, b_ref):
        # instance-norm over the sequence axis N per (batch, feature), biased var.
        mean = jnp.mean(t, axis=1, keepdims=True)                     # (bb, 1, D)
        var = jnp.mean((t - mean) ** 2, axis=1, keepdims=True)
        tn = (t - mean) * jax.lax.rsqrt(var + eps)
        return tn * g_ref[0] + b_ref[0]                               # (1, D) broadcasts

    # ---------------- sublayer 1: AdaIN -> multi-head attention -> residual ----------------
    xn = adain(x, g1_ref, be1_ref)
    xf = xn.reshape(bb * N, D).astype(jnp.bfloat16)                   # rows = bb*N

    attn_acc = jnp.zeros((bb * N, D), jnp.float32)
    for h in range(heads):                                            # static unroll
        wq = wqkv_ref[0, 0 * heads + h]                               # (D, dh) bf16
        wk = wqkv_ref[0, 1 * heads + h]
        wv = wqkv_ref[0, 2 * heads + h]
        q = jnp.dot(xf, wq, preferred_element_type=jnp.float32)       # (bb*N, dh)
        k = jnp.dot(xf, wk, preferred_element_type=jnp.float32)
        v = jnp.dot(xf, wv, preferred_element_type=jnp.float32)
        qb = q.reshape(bb, N, dim_head).astype(jnp.bfloat16)
        kb = k.reshape(bb, N, dim_head).astype(jnp.bfloat16)
        vb = v.reshape(bb, N, dim_head).astype(jnp.bfloat16)

        s = jnp.einsum('bnd,bmd->bnm', qb, kb,
                       preferred_element_type=jnp.float32) * scale    # (bb, N, N)
        s = s - jnp.max(s, axis=-1, keepdims=True)
        e = jnp.exp(s)
        p = e * pl.reciprocal(jnp.sum(e, axis=-1, keepdims=True), approx=True)
        ctx = jnp.einsum('bnm,bmd->bnd', p.astype(jnp.bfloat16), vb,
                         preferred_element_type=jnp.float32)          # (bb, N, dh)

        # fold the head-concat into the output projection: out @ Wo == sum_h out_h @ Wo_h
        attn_acc = attn_acc + jnp.dot(
            ctx.reshape(bb * N, dim_head).astype(jnp.bfloat16),
            wo_ref[0, h], preferred_element_type=jnp.float32)         # (bb*N, D)

    x1 = x + (attn_acc + bo_ref[0]).reshape(bb, N, D)                 # residual

    # ---------------- sublayer 2: AdaIN -> MLP (GELU) -> residual ----------------
    xn2 = adain(x1, g2_ref, be2_ref)
    xf2 = xn2.reshape(bb * N, D).astype(jnp.bfloat16)
    h1 = jnp.dot(xf2, w1_ref[0], preferred_element_type=jnp.float32) + bb1_ref[0]
    # exact GELU (PyTorch nn.GELU default): 0.5*x*(1+erf(x/sqrt(2)))
    h1 = 0.5 * h1 * (1.0 + jax.lax.erf(h1 * jnp.float32(0.7071067811865476)))
    y = jnp.dot(h1.astype(jnp.bfloat16), w2_ref[0],
                preferred_element_type=jnp.float32) + bb2_ref[0]
    out = x1 + y.reshape(bb, N, D)                                    # residual

    acc_ref[...] = out

    @pl.when(layer == depth - 1)
    def _():
        o_ref[...] = out.astype(o_ref.dtype)


def transformer_layer_forward(x, params, *, heads, dim_head):
    """Full TransformerLayer forward (all depth layers) in one pallas_call."""
    B, N, D = x.shape
    g1, be1, wqkv, wo, bo, g2, be2, w1, bb1, w2, bb2 = params
    depth = g1.shape[0]

    # 2 batch chunks when possible -> "parallel" axis feeds both v7x TensorCores;
    # otherwise a single full-batch chunk (max MXU rows on single-TC chips).
    num_bb = 2 if (B >= 2 and B % 2 == 0) else 1
    bb = B // num_bb

    kernel = functools.partial(
        _transformer_stack_kernel,
        heads=heads,
        dim_head=dim_head,
        scale=float(dim_head) ** -0.5,
        eps=1e-6,                       # PreInstanceNorm uses eps=1e-06
    )

    act_spec = pl.BlockSpec((bb, N, D), lambda b, l: (b, 0, 0))

    def layer_spec(arr):
        nrest = arr.ndim - 1
        return pl.BlockSpec((1,) + arr.shape[1:],
                            lambda b, l, _n=nrest: (l,) + (0,) * _n)

    weights = (g1, be1, wqkv, wo, bo, g2, be2, w1, bb1, w2, bb2)

    return pl.pallas_call(
        kernel,
        out_shape=jax.ShapeDtypeStruct((B, N, D), x.dtype),
        grid=(num_bb, depth),
        in_specs=[act_spec] + [layer_spec(w) for w in weights],
        out_specs=act_spec,
        scratch_shapes=[pltpu.VMEM((bb, N, D), jnp.float32)],
        compiler_params=pltpu.CompilerParams(
            dimension_semantics=("parallel", "arbitrary")),
    )(x, *weights)


def init_params(key, *, depth, dim, heads, dim_head, mlp_dim):
    """Per-layer params stacked on a leading depth axis; matmul weights in bf16."""
    ks = jax.random.split(key, 11)
    f32, bf16 = jnp.float32, jnp.bfloat16
    g1 = 1.0 + 0.1 * jax.random.normal(ks[0], (depth, 1, dim), f32)
    be1 = 0.1 * jax.random.normal(ks[1], (depth, 1, dim), f32)
    # head-blocked QKV weights: [depth, (q|k|v)*heads, dim, dim_head]
    wqkv = (0.02 * jax.random.normal(ks[2], (depth, 3 * heads, dim, dim_head), f32)).astype(bf16)
    # head-blocked output projection: [depth, heads, dim_head, dim]
    wo = (0.02 * jax.random.normal(ks[3], (depth, heads, dim_head, dim), f32)).astype(bf16)
    bo = 0.02 * jax.random.normal(ks[4], (depth, 1, dim), f32)
    g2 = 1.0 + 0.1 * jax.random.normal(ks[5], (depth, 1, dim), f32)
    be2 = 0.1 * jax.random.normal(ks[6], (depth, 1, dim), f32)
    w1 = (0.02 * jax.random.normal(ks[7], (depth, dim, mlp_dim), f32)).astype(bf16)
    bb1 = 0.02 * jax.random.normal(ks[8], (depth, 1, mlp_dim), f32)
    w2 = (0.02 * jax.random.normal(ks[9], (depth, mlp_dim, dim), f32)).astype(bf16)
    bb2 = 0.02 * jax.random.normal(ks[10], (depth, 1, dim), f32)
    return (g1, be1, wqkv, wo, bo, g2, be2, w1, bb1, w2, bb2)


if __name__ == "__main__":
    # small, module-consistent shapes
    B, N, dim = 2, 8, 32
    depth, heads, dim_head, mlp_dim = 2, 4, 16, 64

    key = jax.random.PRNGKey(0)
    kx, kp = jax.random.split(key)
    x = jax.random.normal(kx, (B, N, dim), jnp.float32)
    params = init_params(kp, depth=depth, dim=dim, heads=heads,
                         dim_head=dim_head, mlp_dim=mlp_dim)

    out = transformer_layer_forward(x, params, heads=heads, dim_head=dim_head)
    out = jax.block_until_ready(out)
    assert out.shape == (B, N, dim) and out.dtype == jnp.float32
    print("KERNEL_OK")
</pallas_src>

<mosaic_0001>
module attributes {stable_mosaic.version = 11 : i64} {
  func.func @_transformer_stack_kernel(%arg0: i32, %arg1: i32, %arg2: memref<1x8x32xf32, #tpu.memory_space<vmem>>, %arg3: memref<1x1x32xf32, #tpu.memory_space<vmem>>, %arg4: memref<1x1x32xf32, #tpu.memory_space<vmem>>, %arg5: memref<1x12x32x16xbf16, #tpu.memory_space<vmem>>, %arg6: memref<1x4x16x32xbf16, #tpu.memory_space<vmem>>, %arg7: memref<1x1x32xf32, #tpu.memory_space<vmem>>, %arg8: memref<1x1x32xf32, #tpu.memory_space<vmem>>, %arg9: memref<1x1x32xf32, #tpu.memory_space<vmem>>, %arg10: memref<1x32x64xbf16, #tpu.memory_space<vmem>>, %arg11: memref<1x1x64xf32, #tpu.memory_space<vmem>>, %arg12: memref<1x64x32xbf16, #tpu.memory_space<vmem>>, %arg13: memref<1x1x32xf32, #tpu.memory_space<vmem>>, %arg14: memref<1x8x32xf32, #tpu.memory_space<vmem>>, %arg15: memref<1x8x32xf32, #tpu.memory_space<vmem>>) attributes {dimension_semantics = [#tpu.dimension_semantics<parallel>, #tpu.dimension_semantics<arbitrary>], iteration_bounds = array<i64: 2, 2>, scalar_prefetch = 0 : i64, scratch_operands = 1 : i64, tpu.core_type = #tpu.core_type<tc>, window_params = [{transform_indices = @transform_0, window_bounds = array<i64: 1, 8, 32>}, {transform_indices = @transform_1, window_bounds = array<i64: 1, 1, 32>}, {transform_indices = @transform_2, window_bounds = array<i64: 1, 1, 32>}, {transform_indices = @transform_3, window_bounds = array<i64: 1, 12, 32, 16>}, {transform_indices = @transform_4, window_bounds = array<i64: 1, 4, 16, 32>}, {transform_indices = @transform_5, window_bounds = array<i64: 1, 1, 32>}, {transform_indices = @transform_6, window_bounds = array<i64: 1, 1, 32>}, {transform_indices = @transform_7, window_bounds = array<i64: 1, 1, 32>}, {transform_indices = @transform_8, window_bounds = array<i64: 1, 32, 64>}, {transform_indices = @transform_9, window_bounds = array<i64: 1, 1, 64>}, {transform_indices = @transform_10, window_bounds = array<i64: 1, 64, 32>}, {transform_indices = @transform_11, window_bounds = array<i64: 1, 1, 32>}, {transform_indices = @transform_12, window_bounds = array<i64: 1, 8, 32>}]} {
    %c0_i32 = arith.constant 0 : i32
    %0 = arith.cmpi eq, %arg1, %c0_i32 : i32
    %1 = arith.extui %0 : i1 to i32
    %c0_i32_0 = arith.constant 0 : i32
    %2 = arith.cmpi ne, %1, %c0_i32_0 : i32
    scf.if %2 {
      %c0_138 = arith.constant 0 : index
      %c0_139 = arith.constant 0 : index
      %c0_140 = arith.constant 0 : index
      %244 = vector.load %arg2[%c0_138, %c0_139, %c0_140] : memref<1x8x32xf32, #tpu.memory_space<vmem>>, vector<1x8x32xf32>
      %c0_141 = arith.constant 0 : index
      %c0_142 = arith.constant 0 : index
      %c0_143 = arith.constant 0 : index
      %245 = vector.load %arg15[%c0_141, %c0_142, %c0_143] : memref<1x8x32xf32, #tpu.memory_space<vmem>>, vector<1x8x32xf32>
      tpu.vector_store %arg15[%c0_141, %c0_142, %c0_143], %244 {strides = array<i32>} : memref<1x8x32xf32, #tpu.memory_space<vmem>>, vector<1x8x32xf32>,
    } else {
    }
    %c0 = arith.constant 0 : index
    %c0_1 = arith.constant 0 : index
    %c0_2 = arith.constant 0 : index
    %3 = vector.load %arg15[%c0, %c0_1, %c0_2] : memref<1x8x32xf32, #tpu.memory_space<vmem>>, vector<1x8x32xf32>
    %cst = arith.constant dense<0.000000e+00> : vector<1x32xf32>
    %4 = vector.multi_reduction <add>, %3, %cst [1] : vector<1x8x32xf32> to vector<1x32xf32>
    %5 = vector.shape_cast %4 : vector<1x32xf32> to vector<1x1x32xf32>
    %cst_3 = arith.constant 8.000000e+00 : f32
    %6 = vector.broadcast %cst_3 : f32 to vector<1x1x32xf32>
    %7 = arith.divf %5, %6 : vector<1x1x32xf32>
    %8 = vector.broadcast %7 : vector<1x1x32xf32> to vector<1x8x32xf32>
    %9 = arith.subf %3, %8 : vector<1x8x32xf32>
    %10 = arith.mulf %9, %9 : vector<1x8x32xf32>
    %cst_4 = arith.constant dense<0.000000e+00> : vector<1x32xf32>
    %11 = vector.multi_reduction <add>, %10, %cst_4 [1] : vector<1x8x32xf32> to vector<1x32xf32>
    %12 = vector.shape_cast %11 : vector<1x32xf32> to vector<1x1x32xf32>
    %cst_5 = arith.constant 8.000000e+00 : f32
    %13 = vector.broadcast %cst_5 : f32 to vector<1x1x32xf32>
    %14 = arith.divf %12, %13 : vector<1x1x32xf32>
    %15 = vector.broadcast %7 : vector<1x1x32xf32> to vector<1x8x32xf32>
    %16 = arith.subf %3, %15 : vector<1x8x32xf32>
    %cst_6 = arith.constant 9.99999997E-7 : f32
    %17 = vector.broadcast %cst_6 : f32 to vector<1x1x32xf32>
    %18 = arith.addf %14, %17 : vector<1x1x32xf32>
    %19 = math.rsqrt %18 : vector<1x1x32xf32>
    %20 = vector.broadcast %19 : vector<1x1x32xf32> to vector<1x8x32xf32>
    %21 = arith.mulf %16, %20 : vector<1x8x32xf32>
    %c0_7 = arith.constant 0 : index
    %c0_8 = arith.constant 0 : index
    %c0_9 = arith.constant 0 : index
    %22 = vector.load %arg3[%c0_7, %c0_8, %c0_9] : memref<1x1x32xf32, #tpu.memory_space<vmem>>, vector<1x1x32xf32>
    %23 = vector.shape_cast %22 : vector<1x1x32xf32> to vector<1x32xf32>
    %24 = vector.shape_cast %23 : vector<1x32xf32> to vector<1x1x32xf32>
    %25 = vector.broadcast %24 : vector<1x1x32xf32> to vector<1x8x32xf32>
    %26 = arith.mulf %21, %25 : vector<1x8x32xf32>
    %c0_10 = arith.constant 0 : index
    %c0_11 = arith.constant 0 : index
    %c0_12 = arith.constant 0 : index
    %27 = vector.load %arg4[%c0_10, %c0_11, %c0_12] : memref<1x1x32xf32, #tpu.memory_space<vmem>>, vector<1x1x32xf32>
    %28 = vector.shape_cast %27 : vector<1x1x32xf32> to vector<1x32xf32>
    %29 = vector.shape_cast %28 : vector<1x32xf32> to vector<1x1x32xf32>
    %30 = vector.broadcast %29 : vector<1x1x32xf32> to vector<1x8x32xf32>
    %31 = arith.addf %26, %30 : vector<1x8x32xf32>
    %32 = vector.shape_cast %31 : vector<1x8x32xf32> to vector<8x32xf32>
    %33 = arith.truncf %32 : vector<8x32xf32> to vector<8x32xbf16>
    %cst_13 = arith.constant 0.000000e+00 : f32
    %34 = vector.broadcast %cst_13 : f32 to vector<8x32xf32>
    %c0_14 = arith.constant 0 : index
    %c0_15 = arith.constant 0 : index
    %c0_16 = arith.constant 0 : index
    %c0_17 = arith.constant 0 : index
    %35 = vector.load %arg5[%c0_14, %c0_15, %c0_16, %c0_17] : memref<1x12x32x16xbf16, #tpu.memory_space<vmem>>, vector<1x1x32x16xbf16>
    %36 = vector.shape_cast %35 : vector<1x1x32x16xbf16> to vector<32x16xbf16>
    %c0_18 = arith.constant 0 : index
    %c4 = arith.constant 4 : index
    %c0_19 = arith.constant 0 : index
    %c0_20 = arith.constant 0 : index
    %37 = vector.load %arg5[%c0_18, %c4, %c0_19, %c0_20] : memref<1x12x32x16xbf16, #tpu.memory_space<vmem>>, vector<1x1x32x16xbf16>
    %38 = vector.shape_cast %37 : vector<1x1x32x16xbf16> to vector<32x16xbf16>
    %c0_21 = arith.constant 0 : index
    %c8 = arith.constant 8 : index
    %c0_22 = arith.constant 0 : index
    %c0_23 = arith.constant 0 : index
    %39 = vector.load %arg5[%c0_21, %c8, %c0_22, %c0_23] : memref<1x12x32x16xbf16, #tpu.memory_space<vmem>>, vector<1x1x32x16xbf16>
    %40 = vector.shape_cast %39 : vector<1x1x32x16xbf16> to vector<32x16xbf16>
    %cst_24 = arith.constant dense<0.000000e+00> : vector<8x16xf32>
    %41 = tpu.matmul %33, %36, %cst_24 {dimension_numbers = #tpu.dot_dimension_numbers<[1], [0], [0], [1], [0, 0, 1, 1], [], []>} : vector<8x32xbf16>, vector<32x16xbf16>, vector<8x16xf32> -> vector<8x16xf32>
    %cst_25 = arith.constant dense<0.000000e+00> : vector<8x16xf32>
    %42 = tpu.matmul %33, %38, %cst_25 {dimension_numbers = #tpu.dot_dimension_numbers<[1], [0], [0], [1], [0, 0, 1, 1], [], []>} : vector<8x32xbf16>, vector<32x16xbf16>, vector<8x16xf32> -> vector<8x16xf32>
    %cst_26 = arith.constant dense<0.000000e+00> : vector<8x16xf32>
    %43 = tpu.matmul %33, %40, %cst_26 {dimension_numbers = #tpu.dot_dimension_numbers<[1], [0], [0], [1], [0, 0, 1, 1], [], []>} : vector<8x32xbf16>, vector<32x16xbf16>, vector<8x16xf32> -> vector<8x16xf32>
    %44 = vector.shape_cast %41 : vector<8x16xf32> to vector<1x8x16xf32>
    %45 = arith.truncf %44 : vector<1x8x16xf32> to vector<1x8x16xbf16>
    %46 = vector.shape_cast %42 : vector<8x16xf32> to vector<1x8x16xf32>
    %47 = arith.truncf %46 : vector<1x8x16xf32> to vector<1x8x16xbf16>
    %48 = vector.shape_cast %43 : vector<8x16xf32> to vector<1x8x16xf32>
    %49 = arith.truncf %48 : vector<1x8x16xf32> to vector<1x8x16xbf16>
    "tpu.trace_start"() <{level = 10 : i32, message = "bnd,bmd->bnm"}> : () -> ()
    %cst_27 = arith.constant dense<0.000000e+00> : vector<1x8x8xf32>
    %50 = tpu.matmul %45, %47, %cst_27 {dimension_numbers = #tpu.dot_dimension_numbers<[2], [2], [1], [1], [0, 0, 0, 1, 1, 1], [0], [0]>} : vector<1x8x16xbf16>, vector<1x8x16xbf16>, vector<1x8x8xf32> -> vector<1x8x8xf32>
    "tpu.trace_stop"() : () -> ()
    %cst_28 = arith.constant 2.500000e-01 : f32
    %51 = vector.broadcast %cst_28 : f32 to vector<1x8x8xf32>
    %52 = arith.mulf %50, %51 : vector<1x8x8xf32>
    %cst_29 = arith.constant dense<0xFF800000> : vector<1x8xf32>
    %53 = vector.multi_reduction <maximumf>, %52, %cst_29 [2] : vector<1x8x8xf32> to vector<1x8xf32>
    %54 = vector.shape_cast %53 : vector<1x8xf32> to vector<1x8x1xf32>
    %55 = vector.broadcast %54 : vector<1x8x1xf32> to vector<1x8x8xf32>
    %56 = arith.subf %52, %55 : vector<1x8x8xf32>
    %57 = math.exp %56 : vector<1x8x8xf32>
    %cst_30 = arith.constant dense<0.000000e+00> : vector<1x8xf32>
    %58 = vector.multi_reduction <add>, %57, %cst_30 [2] : vector<1x8x8xf32> to vector<1x8xf32>
    %59 = vector.shape_cast %58 : vector<1x8xf32> to vector<1x8x1xf32>
    %60 = tpu.reciprocal %59 {approx = true} : vector<1x8x1xf32> -> vector<1x8x1xf32>
    %61 = vector.broadcast %60 : vector<1x8x1xf32> to vector<1x8x8xf32>
    %62 = arith.mulf %57, %61 : vector<1x8x8xf32>
    %63 = arith.truncf %62 : vector<1x8x8xf32> to vector<1x8x8xbf16>
    "tpu.trace_start"() <{level = 10 : i32, message = "bnm,bmd->bnd"}> : () -> ()
    %cst_31 = arith.constant dense<0.000000e+00> : vector<1x8x16xf32>
    %64 = tpu.matmul %63, %49, %cst_31 {dimension_numbers = #tpu.dot_dimension_numbers<[2], [1], [1], [2], [0, 0, 0, 1, 1, 2], [0], [0]>} : vector<1x8x8xbf16>, vector<1x8x16xbf16>, vector<1x8x16xf32> -> vector<1x8x16xf32>
    "tpu.trace_stop"() : () -> ()
    %65 = vector.shape_cast %64 : vector<1x8x16xf32> to vector<8x16xf32>
    %66 = arith.truncf %65 : vector<8x16xf32> to vector<8x16xbf16>
    %c0_32 = arith.constant 0 : index
    %c0_33 = arith.constant 0 : index
    %c0_34 = arith.constant 0 : index
    %c0_35 = arith.constant 0 : index
    %67 = vector.load %arg6[%c0_32, %c0_33, %c0_34, %c0_35] : memref<1x4x16x32xbf16, #tpu.memory_space<vmem>>, vector<1x1x16x32xbf16>
    %68 = vector.shape_cast %67 : vector<1x1x16x32xbf16> to vector<16x32xbf16>
    %cst_36 = arith.constant dense<0.000000e+00> : vector<8x32xf32>
    %69 = tpu.matmul %66, %68, %cst_36 {dimension_numbers = #tpu.dot_dimension_numbers<[1], [0], [0], [1], [0, 0, 1, 1], [], []>} : vector<8x16xbf16>, vector<16x32xbf16>, vector<8x32xf32> -> vector<8x32xf32>
    %70 = arith.addf %34, %69 : vector<8x32xf32>
    %c0_37 = arith.constant 0 : index
    %c1 = arith.constant 1 : index
    %c0_38 = arith.constant 0 : index
    %c0_39 = arith.constant 0 : index
    %71 = vector.load %arg5[%c0_37, %c1, %c0_38, %c0_39] : memref<1x12x32x16xbf16, #tpu.memory_space<vmem>>, vector<1x1x32x16xbf16>
    %72 = vector.shape_cast %71 : vector<1x1x32x16xbf16> to vector<32x16xbf16>
    %c0_40 = arith.constant 0 : index
    %c5 = arith.constant 5 : index
    %c0_41 = arith.constant 0 : index
    %c0_42 = arith.constant 0 : index
    %73 = vector.load %arg5[%c0_40, %c5, %c0_41, %c0_42] : memref<1x12x32x16xbf16, #tpu.memory_space<vmem>>, vector<1x1x32x16xbf16>
    %74 = vector.shape_cast %73 : vector<1x1x32x16xbf16> to vector<32x16xbf16>
    %c0_43 = arith.constant 0 : index
    %c9 = arith.constant 9 : index
    %c0_44 = arith.constant 0 : index
    %c0_45 = arith.constant 0 : index
    %75 = vector.load %arg5[%c0_43, %c9, %c0_44, %c0_45] : memref<1x12x32x16xbf16, #tpu.memory_space<vmem>>, vector<1x1x32x16xbf16>
    %76 = vector.shape_cast %75 : vector<1x1x32x16xbf16> to vector<32x16xbf16>
    %cst_46 = arith.constant dense<0.000000e+00> : vector<8x16xf32>
    %77 = tpu.matmul %33, %72, %cst_46 {dimension_numbers = #tpu.dot_dimension_numbers<[1], [0], [0], [1], [0, 0, 1, 1], [], []>} : vector<8x32xbf16>, vector<32x16xbf16>, vector<8x16xf32> -> vector<8x16xf32>
    %cst_47 = arith.constant dense<0.000000e+00> : vector<8x16xf32>
    %78 = tpu.matmul %33, %74, %cst_47 {dimension_numbers = #tpu.dot_dimension_numbers<[1], [0], [0], [1], [0, 0, 1, 1], [], []>} : vector<8x32xbf16>, vector<32x16xbf16>, vector<8x16xf32> -> vector<8x16xf32>
    %cst_48 = arith.constant dense<0.000000e+00> : vector<8x16xf32>
    %79 = tpu.matmul %33, %76, %cst_48 {dimension_numbers = #tpu.dot_dimension_numbers<[1], [0], [0], [1], [0, 0, 1, 1], [], []>} : vector<8x32xbf16>, vector<32x16xbf16>, vector<8x16xf32> -> vector<8x16xf32>
    %80 = vector.shape_cast %77 : vector<8x16xf32> to vector<1x8x16xf32>
    %81 = arith.truncf %80 : vector<1x8x16xf32> to vector<1x8x16xbf16>
    %82 = vector.shape_cast %78 : vector<8x16xf32> to vector<1x8x16xf32>
    %83 = arith.truncf %82 : vector<1x8x16xf32> to vector<1x8x16xbf16>
    %84 = vector.shape_cast %79 : vector<8x16xf32> to vector<1x8x16xf32>
    %85 = arith.truncf %84 : vector<1x8x16xf32> to vector<1x8x16xbf16>
    "tpu.trace_start"() <{level = 10 : i32, message = "bnd,bmd->bnm"}> : () -> ()
    %cst_49 = arith.constant dense<0.000000e+00> : vector<1x8x8xf32>
    %86 = tpu.matmul %81, %83, %cst_49 {dimension_numbers = #tpu.dot_dimension_numbers<[2], [2], [1], [1], [0, 0, 0, 1, 1, 1], [0], [0]>} : vector<1x8x16xbf16>, vector<1x8x16xbf16>, vector<1x8x8xf32> -> vector<1x8x8xf32>
    "tpu.trace_stop"() : () -> ()
    %cst_50 = arith.constant 2.500000e-01 : f32
    %87 = vector.broadcast %cst_50 : f32 to vector<1x8x8xf32>
    %88 = arith.mulf %86, %87 : vector<1x8x8xf32>
    %cst_51 = arith.constant dense<0xFF800000> : vector<1x8xf32>
    %89 = vector.multi_reduction <maximumf>, %88, %cst_51 [2] : vector<1x8x8xf32> to vector<1x8xf32>
    %90 = vector.shape_cast %89 : vector<1x8xf32> to vector<1x8x1xf32>
    %91 = vector.broadcast %90 : vector<1x8x1xf32> to vector<1x8x8xf32>
    %92 = arith.subf %88, %91 : vector<1x8x8xf32>
    %93 = math.exp %92 : vector<1x8x8xf32>
    %cst_52 = arith.constant dense<0.000000e+00> : vector<1x8xf32>
    %94 = vector.multi_reduction <add>, %93, %cst_52 [2] : vector<1x8x8xf32> to vector<1x8xf32>
    %95 = vector.shape_cast %94 : vector<1x8xf32> to vector<1x8x1xf32>
    %96 = tpu.reciprocal %95 {approx = true} : vector<1x8x1xf32> -> vector<1x8x1xf32>
    %97 = vector.broadcast %96 : vector<1x8x1xf32> to vector<1x8x8xf32>
    %98 = arith.mulf %93, %97 : vector<1x8x8xf32>
    %99 = arith.truncf %98 : vector<1x8x8xf32> to vector<1x8x8xbf16>
    "tpu.trace_start"() <{level = 10 : i32, message = "bnm,bmd->bnd"}> : () -> ()
    %cst_53 = arith.constant dense<0.000000e+00> : vector<1x8x16xf32>
    %100 = tpu.matmul %99, %85, %cst_53 {dimension_numbers = #tpu.dot_dimension_numbers<[2], [1], [1], [2], [0, 0, 0, 1, 1, 2], [0], [0]>} : vector<1x8x8xbf16>, vector<1x8x16xbf16>, vector<1x8x16xf32> -> vector<1x8x16xf32>
    "tpu.trace_stop"() : () -> ()
    %101 = vector.shape_cast %100 : vector<1x8x16xf32> to vector<8x16xf32>
    %102 = arith.truncf %101 : vector<8x16xf32> to vector<8x16xbf16>
    %c0_54 = arith.constant 0 : index
    %c1_55 = arith.constant 1 : index
    %c0_56 = arith.constant 0 : index
    %c0_57 = arith.constant 0 : index
    %103 = vector.load %arg6[%c0_54, %c1_55, %c0_56, %c0_57] : memref<1x4x16x32xbf16, #tpu.memory_space<vmem>>, vector<1x1x16x32xbf16>
    %104 = vector.shape_cast %103 : vector<1x1x16x32xbf16> to vector<16x32xbf16>
    %cst_58 = arith.constant dense<0.000000e+00> : vector<8x32xf32>
    %105 = tpu.matmul %102, %104, %cst_58 {dimension_numbers = #tpu.dot_dimension_numbers<[1], [0], [0], [1], [0, 0, 1, 1], [], []>} : vector<8x16xbf16>, vector<16x32xbf16>, vector<8x32xf32> -> vector<8x32xf32>
    %106 = arith.addf %70, %105 : vector<8x32xf32>
    %c0_59 = arith.constant 0 : index
    %c2 = arith.constant 2 : index
    %c0_60 = arith.constant 0 : index
    %c0_61 = arith.constant 0 : index
    %107 = vector.load %arg5[%c0_59, %c2, %c0_60, %c0_61] : memref<1x12x32x16xbf16, #tpu.memory_space<vmem>>, vector<1x1x32x16xbf16>
    %108 = vector.shape_cast %107 : vector<1x1x32x16xbf16> to vector<32x16xbf16>
    %c0_62 = arith.constant 0 : index
    %c6 = arith.constant 6 : index
    %c0_63 = arith.constant 0 : index
    %c0_64 = arith.constant 0 : index
    %109 = vector.load %arg5[%c0_62, %c6, %c0_63, %c0_64] : memref<1x12x32x16xbf16, #tpu.memory_space<vmem>>, vector<1x1x32x16xbf16>
    %110 = vector.shape_cast %109 : vector<1x1x32x16xbf16> to vector<32x16xbf16>
    %c0_65 = arith.constant 0 : index
    %c10 = arith.constant 10 : index
    %c0_66 = arith.constant 0 : index
    %c0_67 = arith.constant 0 : index
    %111 = vector.load %arg5[%c0_65, %c10, %c0_66, %c0_67] : memref<1x12x32x16xbf16, #tpu.memory_space<vmem>>, vector<1x1x32x16xbf16>
    %112 = vector.shape_cast %111 : vector<1x1x32x16xbf16> to vector<32x16xbf16>
    %cst_68 = arith.constant dense<0.000000e+00> : vector<8x16xf32>
    %113 = tpu.matmul %33, %108, %cst_68 {dimension_numbers = #tpu.dot_dimension_numbers<[1], [0], [0], [1], [0, 0, 1, 1], [], []>} : vector<8x32xbf16>, vector<32x16xbf16>, vector<8x16xf32> -> vector<8x16xf32>
    %cst_69 = arith.constant dense<0.000000e+00> : vector<8x16xf32>
    %114 = tpu.matmul %33, %110, %cst_69 {dimension_numbers = #tpu.dot_dimension_numbers<[1], [0], [0], [1], [0, 0, 1, 1], [], []>} : vector<8x32xbf16>, vector<32x16xbf16>, vector<8x16xf32> -> vector<8x16xf32>
    %cst_70 = arith.constant dense<0.000000e+00> : vector<8x16xf32>
    %115 = tpu.matmul %33, %112, %cst_70 {dimension_numbers = #tpu.dot_dimension_numbers<[1], [0], [0], [1], [0, 0, 1, 1], [], []>} : vector<8x32xbf16>, vector<32x16xbf16>, vector<8x16xf32> -> vector<8x16xf32>
    %116 = vector.shape_cast %113 : vector<8x16xf32> to vector<1x8x16xf32>
    %117 = arith.truncf %116 : vector<1x8x16xf32> to vector<1x8x16xbf16>
    %118 = vector.shape_cast %114 : vector<8x16xf32> to vector<1x8x16xf32>
    %119 = arith.truncf %118 : vector<1x8x16xf32> to vector<1x8x16xbf16>
    %120 = vector.shape_cast %115 : vector<8x16xf32> to vector<1x8x16xf32>
    %121 = arith.truncf %120 : vector<1x8x16xf32> to vector<1x8x16xbf16>
    "tpu.trace_start"() <{level = 10 : i32, message = "bnd,bmd->bnm"}> : () -> ()
    %cst_71 = arith.constant dense<0.000000e+00> : vector<1x8x8xf32>
    %122 = tpu.matmul %117, %119, %cst_71 {dimension_numbers = #tpu.dot_dimension_numbers<[2], [2], [1], [1], [0, 0, 0, 1, 1, 1], [0], [0]>} : vector<1x8x16xbf16>, vector<1x8x16xbf16>, vector<1x8x8xf32> -> vector<1x8x8xf32>
    "tpu.trace_stop"() : () -> ()
    %cst_72 = arith.constant 2.500000e-01 : f32
    %123 = vector.broadcast %cst_72 : f32 to vector<1x8x8xf32>
    %124 = arith.mulf %122, %123 : vector<1x8x8xf32>
    %cst_73 = arith.constant dense<0xFF800000> : vector<1x8xf32>
    %125 = vector.multi_reduction <maximumf>, %124, %cst_73 [2] : vector<1x8x8xf32> to vector<1x8xf32>
    %126 = vector.shape_cast %125 : vector<1x8xf32> to vector<1x8x1xf32>
    %127 = vector.broadcast %126 : vector<1x8x1xf32> to vector<1x8x8xf32>
    %128 = arith.subf %124, %127 : vector<1x8x8xf32>
    %129 = math.exp %128 : vector<1x8x8xf32>
    %cst_74 = arith.constant dense<0.000000e+00> : vector<1x8xf32>
    %130 = vector.multi_reduction <add>, %129, %cst_74 [2] : vector<1x8x8xf32> to vector<1x8xf32>
    %131 = vector.shape_cast %130 : vector<1x8xf32> to vector<1x8x1xf32>
    %132 = tpu.reciprocal %131 {approx = true} : vector<1x8x1xf32> -> vector<1x8x1xf32>
    %133 = vector.broadcast %132 : vector<1x8x1xf32> to vector<1x8x8xf32>
    %134 = arith.mulf %129, %133 : vector<1x8x8xf32>
    %135 = arith.truncf %134 : vector<1x8x8xf32> to vector<1x8x8xbf16>
    "tpu.trace_start"() <{level = 10 : i32, message = "bnm,bmd->bnd"}> : () -> ()
    %cst_75 = arith.constant dense<0.000000e+00> : vector<1x8x16xf32>
    %136 = tpu.matmul %135, %121, %cst_75 {dimension_numbers = #tpu.dot_dimension_numbers<[2], [1], [1], [2], [0, 0, 0, 1, 1, 2], [0], [0]>} : vector<1x8x8xbf16>, vector<1x8x16xbf16>, vector<1x8x16xf32> -> vector<1x8x16xf32>
    "tpu.trace_stop"() : () -> ()
    %137 = vector.shape_cast %136 : vector<1x8x16xf32> to vector<8x16xf32>
    %138 = arith.truncf %137 : vector<8x16xf32> to vector<8x16xbf16>
    %c0_76 = arith.constant 0 : index
    %c2_77 = arith.constant 2 : index
    %c0_78 = arith.constant 0 : index
    %c0_79 = arith.constant 0 : index
    %139 = vector.load %arg6[%c0_76, %c2_77, %c0_78, %c0_79] : memref<1x4x16x32xbf16, #tpu.memory_space<vmem>>, vector<1x1x16x32xbf16>
    %140 = vector.shape_cast %139 : vector<1x1x16x32xbf16> to vector<16x32xbf16>
    %cst_80 = arith.constant dense<0.000000e+00> : vector<8x32xf32>
    %141 = tpu.matmul %138, %140, %cst_80 {dimension_numbers = #tpu.dot_dimension_numbers<[1], [0], [0], [1], [0, 0, 1, 1], [], []>} : vector<8x16xbf16>, vector<16x32xbf16>, vector<8x32xf32> -> vector<8x32xf32>
    %142 = arith.addf %106, %141 : vector<8x32xf32>
    %c0_81 = arith.constant 0 : index
    %c3 = arith.constant 3 : index
    %c0_82 = arith.constant 0 : index
    %c0_83 = arith.constant 0 : index
    %143 = vector.load %arg5[%c0_81, %c3, %c0_82, %c0_83] : memref<1x12x32x16xbf16, #tpu.memory_space<vmem>>, vector<1x1x32x16xbf16>
    %144 = vector.shape_cast %143 : vector<1x1x32x16xbf16> to vector<32x16xbf16>
    %c0_84 = arith.constant 0 : index
    %c7 = arith.constant 7 : index
    %c0_85 = arith.constant 0 : index
    %c0_86 = arith.constant 0 : index
    %145 = vector.load %arg5[%c0_84, %c7, %c0_85, %c0_86] : memref<1x12x32x16xbf16, #tpu.memory_space<vmem>>, vector<1x1x32x16xbf16>
    %146 = vector.shape_cast %145 : vector<1x1x32x16xbf16> to vector<32x16xbf16>
    %c0_87 = arith.constant 0 : index
    %c11 = arith.constant 11 : index
    %c0_88 = arith.constant 0 : index
    %c0_89 = arith.constant 0 : index
    %147 = vector.load %arg5[%c0_87, %c11, %c0_88, %c0_89] : memref<1x12x32x16xbf16, #tpu.memory_space<vmem>>, vector<1x1x32x16xbf16>
    %148 = vector.shape_cast %147 : vector<1x1x32x16xbf16> to vector<32x16xbf16>
    %cst_90 = arith.constant dense<0.000000e+00> : vector<8x16xf32>
    %149 = tpu.matmul %33, %144, %cst_90 {dimension_numbers = #tpu.dot_dimension_numbers<[1], [0], [0], [1], [0, 0, 1, 1], [], []>} : vector<8x32xbf16>, vector<32x16xbf16>, vector<8x16xf32> -> vector<8x16xf32>
    %cst_91 = arith.constant dense<0.000000e+00> : vector<8x16xf32>
    %150 = tpu.matmul %33, %146, %cst_91 {dimension_numbers = #tpu.dot_dimension_numbers<[1], [0], [0], [1], [0, 0, 1, 1], [], []>} : vector<8x32xbf16>, vector<32x16xbf16>, vector<8x16xf32> -> vector<8x16xf32>
    %cst_92 = arith.constant dense<0.000000e+00> : vector<8x16xf32>
    %151 = tpu.matmul %33, %148, %cst_92 {dimension_numbers = #tpu.dot_dimension_numbers<[1], [0], [0], [1], [0, 0, 1, 1], [], []>} : vector<8x32xbf16>, vector<32x16xbf16>, vector<8x16xf32> -> vector<8x16xf32>
    %152 = vector.shape_cast %149 : vector<8x16xf32> to vector<1x8x16xf32>
    %153 = arith.truncf %152 : vector<1x8x16xf32> to vector<1x8x16xbf16>
    %154 = vector.shape_cast %150 : vector<8x16xf32> to vector<1x8x16xf32>
    %155 = arith.truncf %154 : vector<1x8x16xf32> to vector<1x8x16xbf16>
    %156 = vector.shape_cast %151 : vector<8x16xf32> to vector<1x8x16xf32>
    %157 = arith.truncf %156 : vector<1x8x16xf32> to vector<1x8x16xbf16>
    "tpu.trace_start"() <{level = 10 : i32, message = "bnd,bmd->bnm"}> : () -> ()
    %cst_93 = arith.constant dense<0.000000e+00> : vector<1x8x8xf32>
    %158 = tpu.matmul %153, %155, %cst_93 {dimension_numbers = #tpu.dot_dimension_numbers<[2], [2], [1], [1], [0, 0, 0, 1, 1, 1], [0], [0]>} : vector<1x8x16xbf16>, vector<1x8x16xbf16>, vector<1x8x8xf32> -> vector<1x8x8xf32>
    "tpu.trace_stop"() : () -> ()
    %cst_94 = arith.constant 2.500000e-01 : f32
    %159 = vector.broadcast %cst_94 : f32 to vector<1x8x8xf32>
    %160 = arith.mulf %158, %159 : vector<1x8x8xf32>
    %cst_95 = arith.constant dense<0xFF800000> : vector<1x8xf32>
    %161 = vector.multi_reduction <maximumf>, %160, %cst_95 [2] : vector<1x8x8xf32> to vector<1x8xf32>
    %162 = vector.shape_cast %161 : vector<1x8xf32> to vector<1x8x1xf32>
    %163 = vector.broadcast %162 : vector<1x8x1xf32> to vector<1x8x8xf32>
    %164 = arith.subf %160, %163 : vector<1x8x8xf32>
    %165 = math.exp %164 : vector<1x8x8xf32>
    %cst_96 = arith.constant dense<0.000000e+00> : vector<1x8xf32>
    %166 = vector.multi_reduction <add>, %165, %cst_96 [2] : vector<1x8x8xf32> to vector<1x8xf32>
    %167 = vector.shape_cast %166 : vector<1x8xf32> to vector<1x8x1xf32>
    %168 = tpu.reciprocal %167 {approx = true} : vector<1x8x1xf32> -> vector<1x8x1xf32>
    %169 = vector.broadcast %168 : vector<1x8x1xf32> to vector<1x8x8xf32>
    %170 = arith.mulf %165, %169 : vector<1x8x8xf32>
    %171 = arith.truncf %170 : vector<1x8x8xf32> to vector<1x8x8xbf16>
    "tpu.trace_start"() <{level = 10 : i32, message = "bnm,bmd->bnd"}> : () -> ()
    %cst_97 = arith.constant dense<0.000000e+00> : vector<1x8x16xf32>
    %172 = tpu.matmul %171, %157, %cst_97 {dimension_numbers = #tpu.dot_dimension_numbers<[2], [1], [1], [2], [0, 0, 0, 1, 1, 2], [0], [0]>} : vector<1x8x8xbf16>, vector<1x8x16xbf16>, vector<1x8x16xf32> -> vector<1x8x16xf32>
    "tpu.trace_stop"() : () -> ()
    %173 = vector.shape_cast %172 : vector<1x8x16xf32> to vector<8x16xf32>
    %174 = arith.truncf %173 : vector<8x16xf32> to vector<8x16xbf16>
    %c0_98 = arith.constant 0 : index
    %c3_99 = arith.constant 3 : index
    %c0_100 = arith.constant 0 : index
    %c0_101 = arith.constant 0 : index
    %175 = vector.load %arg6[%c0_98, %c3_99, %c0_100, %c0_101] : memref<1x4x16x32xbf16, #tpu.memory_space<vmem>>, vector<1x1x16x32xbf16>
    %176 = vector.shape_cast %175 : vector<1x1x16x32xbf16> to vector<16x32xbf16>
    %cst_102 = arith.constant dense<0.000000e+00> : vector<8x32xf32>
    %177 = tpu.matmul %174, %176, %cst_102 {dimension_numbers = #tpu.dot_dimension_numbers<[1], [0], [0], [1], [0, 0, 1, 1], [], []>} : vector<8x16xbf16>, vector<16x32xbf16>, vector<8x32xf32> -> vector<8x32xf32>
    %178 = arith.addf %142, %177 : vector<8x32xf32>
    %c0_103 = arith.constant 0 : index
    %c0_104 = arith.constant 0 : index
    %c0_105 = arith.constant 0 : index
    %179 = vector.load %arg7[%c0_103, %c0_104, %c0_105] : memref<1x1x32xf32, #tpu.memory_space<vmem>>, vector<1x1x32xf32>
    %180 = vector.shape_cast %179 : vector<1x1x32xf32> to vector<1x32xf32>
    %181 = vector.broadcast %180 : vector<1x32xf32> to vector<8x32xf32>
    %182 = arith.addf %178, %181 : vector<8x32xf32>
    %183 = vector.shape_cast %182 : vector<8x32xf32> to vector<1x8x32xf32>
    %184 = arith.addf %3, %183 : vector<1x8x32xf32>
    %cst_106 = arith.constant dense<0.000000e+00> : vector<1x32xf32>
    %185 = vector.multi_reduction <add>, %184, %cst_106 [1] : vector<1x8x32xf32> to vector<1x32xf32>
    %186 = vector.shape_cast %185 : vector<1x32xf32> to vector<1x1x32xf32>
    %cst_107 = arith.constant 8.000000e+00 : f32
    %187 = vector.broadcast %cst_107 : f32 to vector<1x1x32xf32>
    %188 = arith.divf %186, %187 : vector<1x1x32xf32>
    %189 = vector.broadcast %188 : vector<1x1x32xf32> to vector<1x8x32xf32>
    %190 = arith.subf %184, %189 : vector<1x8x32xf32>
    %191 = arith.mulf %190, %190 : vector<1x8x32xf32>
    %cst_108 = arith.constant dense<0.000000e+00> : vector<1x32xf32>
    %192 = vector.multi_reduction <add>, %191, %cst_108 [1] : vector<1x8x32xf32> to vector<1x32xf32>
    %193 = vector.shape_cast %192 : vector<1x32xf32> to vector<1x1x32xf32>
    %cst_109 = arith.constant 8.000000e+00 : f32
    %194 = vector.broadcast %cst_109 : f32 to vector<1x1x32xf32>
    %195 = arith.divf %193, %194 : vector<1x1x32xf32>
    %196 = vector.broadcast %188 : vector<1x1x32xf32> to vector<1x8x32xf32>
    %197 = arith.subf %184, %196 : vector<1x8x32xf32>
    %cst_110 = arith.constant 9.99999997E-7 : f32
    %198 = vector.broadcast %cst_110 : f32 to vector<1x1x32xf32>
    %199 = arith.addf %195, %198 : vector<1x1x32xf32>
    %200 = math.rsqrt %199 : vector<1x1x32xf32>
    %201 = vector.broadcast %200 : vector<1x1x32xf32> to vector<1x8x32xf32>
    %202 = arith.mulf %197, %201 : vector<1x8x32xf32>
    %c0_111 = arith.constant 0 : index
    %c0_112 = arith.constant 0 : index
    %c0_113 = arith.constant 0 : index
    %203 = vector.load %arg8[%c0_111, %c0_112, %c0_113] : memref<1x1x32xf32, #tpu.memory_space<vmem>>, vector<1x1x32xf32>
    %204 = vector.shape_cast %203 : vector<1x1x32xf32> to vector<1x32xf32>
    %205 = vector.shape_cast %204 : vector<1x32xf32> to vector<1x1x32xf32>
    %206 = vector.broadcast %205 : vector<1x1x32xf32> to vector<1x8x32xf32>
    %207 = arith.mulf %202, %206 : vector<1x8x32xf32>
    %c0_114 = arith.constant 0 : index
    %c0_115 = arith.constant 0 : index
    %c0_116 = arith.constant 0 : index
    %208 = vector.load %arg9[%c0_114, %c0_115, %c0_116] : memref<1x1x32xf32, #tpu.memory_space<vmem>>, vector<1x1x32xf32>
    %209 = vector.shape_cast %208 : vector<1x1x32xf32> to vector<1x32xf32>
    %210 = vector.shape_cast %209 : vector<1x32xf32> to vector<1x1x32xf32>
    %211 = vector.broadcast %210 : vector<1x1x32xf32> to vector<1x8x32xf32>
    %212 = arith.addf %207, %211 : vector<1x8x32xf32>
    %213 = vector.shape_cast %212 : vector<1x8x32xf32> to vector<8x32xf32>
    %214 = arith.truncf %213 : vector<8x32xf32> to vector<8x32xbf16>
    %c0_117 = arith.constant 0 : index
    %c0_118 = arith.constant 0 : index
    %c0_119 = arith.constant 0 : index
    %215 = vector.load %arg10[%c0_117, %c0_118, %c0_119] : memref<1x32x64xbf16, #tpu.memory_space<vmem>>, vector<1x32x64xbf16>
    %216 = vector.shape_cast %215 : vector<1x32x64xbf16> to vector<32x64xbf16>
    %cst_120 = arith.constant dense<0.000000e+00> : vector<8x64xf32>
    %217 = tpu.matmul %214, %216, %cst_120 {dimension_numbers = #tpu.dot_dimension_numbers<[1], [0], [0], [1], [0, 0, 1, 1], [], []>} : vector<8x32xbf16>, vector<32x64xbf16>, vector<8x64xf32> -> vector<8x64xf32>
    %c0_121 = arith.constant 0 : index
    %c0_122 = arith.constant 0 : index
    %c0_123 = arith.constant 0 : index
    %218 = vector.load %arg11[%c0_121, %c0_122, %c0_123] : memref<1x1x64xf32, #tpu.memory_space<vmem>>, vector<1x1x64xf32>
    %219 = vector.shape_cast %218 : vector<1x1x64xf32> to vector<1x64xf32>
    %220 = vector.broadcast %219 : vector<1x64xf32> to vector<8x64xf32>
    %221 = arith.addf %217, %220 : vector<8x64xf32>
    %cst_124 = arith.constant 5.000000e-01 : f32
    %222 = vector.broadcast %cst_124 : f32 to vector<8x64xf32>
    %223 = arith.mulf %222, %221 : vector<8x64xf32>
    %cst_125 = arith.constant 0.707106769 : f32
    %224 = vector.broadcast %cst_125 : f32 to vector<8x64xf32>
    %225 = arith.mulf %221, %224 : vector<8x64xf32>
    %226 = math.erf %225 : vector<8x64xf32>
    %cst_126 = arith.constant 1.000000e+00 : f32
    %227 = vector.broadcast %cst_126 : f32 to vector<8x64xf32>
    %228 = arith.addf %227, %226 : vector<8x64xf32>
    %229 = arith.mulf %223, %228 : vector<8x64xf32>
    %230 = arith.truncf %229 : vector<8x64xf32> to vector<8x64xbf16>
    %c0_127 = arith.constant 0 : index
    %c0_128 = arith.constant 0 : index
    %c0_129 = arith.constant 0 : index
    %231 = vector.load %arg12[%c0_127, %c0_128, %c0_129] : memref<1x64x32xbf16, #tpu.memory_space<vmem>>, vector<1x64x32xbf16>
    %232 = vector.shape_cast %231 : vector<1x64x32xbf16> to vector<64x32xbf16>
    %cst_130 = arith.constant dense<0.000000e+00> : vector<8x32xf32>
    %233 = tpu.matmul %230, %232, %cst_130 {dimension_numbers = #tpu.dot_dimension_numbers<[1], [0], [0], [1], [0, 0, 1, 1], [], []>} : vector<8x64xbf16>, vector<64x32xbf16>, vector<8x32xf32> -> vector<8x32xf32>
    %c0_131 = arith.constant 0 : index
    %c0_132 = arith.constant 0 : index
    %c0_133 = arith.constant 0 : index
    %234 = vector.load %arg13[%c0_131, %c0_132, %c0_133] : memref<1x1x32xf32, #tpu.memory_space<vmem>>, vector<1x1x32xf32>
    %235 = vector.shape_cast %234 : vector<1x1x32xf32> to vector<1x32xf32>
    %236 = vector.broadcast %235 : vector<1x32xf32> to vector<8x32xf32>
    %237 = arith.addf %233, %236 : vector<8x32xf32>
    %238 = vector.shape_cast %237 : vector<8x32xf32> to vector<1x8x32xf32>
    %239 = arith.addf %184, %238 : vector<1x8x32xf32>
    %c0_134 = arith.constant 0 : index
    %c0_135 = arith.constant 0 : index
    %c0_136 = arith.constant 0 : index
    %240 = vector.load %arg15[%c0_134, %c0_135, %c0_136] : memref<1x8x32xf32, #tpu.memory_space<vmem>>, vector<1x8x32xf32>
    tpu.vector_store %arg15[%c0_134, %c0_135, %c0_136], %239 {strides = array<i32>} : memref<1x8x32xf32, #tpu.memory_space<vmem>>, vector<1x8x32xf32>,
    %c1_i32 = arith.constant 1 : i32
    %241 = arith.cmpi eq, %arg1, %c1_i32 : i32
    %242 = arith.extui %241 : i1 to i32
    %c0_i32_137 = arith.constant 0 : i32
    %243 = arith.cmpi ne, %242, %c0_i32_137 : i32
    scf.if %243 {
      %c0_138 = arith.constant 0 : index
      %c0_139 = arith.constant 0 : index
      %c0_140 = arith.constant 0 : index
      %244 = vector.load %arg14[%c0_138, %c0_139, %c0_140] : memref<1x8x32xf32, #tpu.memory_space<vmem>>, vector<1x8x32xf32>
      tpu.vector_store %arg14[%c0_138, %c0_139, %c0_140], %239 {strides = array<i32>} : memref<1x8x32xf32, #tpu.memory_space<vmem>>, vector<1x8x32xf32>,
    } else {
    }
    return
  }
  func.func @transform_0(%arg0: i32, %arg1: i32) -> (i32, i32, i32) {
    %c0_i32 = arith.constant 0 : i32
    %c0_i32_0 = arith.constant 0 : i32
    %c0_i32_1 = arith.constant 0 : i32
    return %arg0, %c0_i32, %c0_i32_0 : i32, i32, i32
  }
  func.func @transform_1(%arg0: i32, %arg1: i32) -> (i32, i32, i32) {
    %c0_i32 = arith.constant 0 : i32
    %c0_i32_0 = arith.constant 0 : i32
    %c0_i32_1 = arith.constant 0 : i32
    return %arg1, %c0_i32, %c0_i32_0 : i32, i32, i32
  }
  func.func @transform_2(%arg0: i32, %arg1: i32) -> (i32, i32, i32) {
    %c0_i32 = arith.constant 0 : i32
    %c0_i32_0 = arith.constant 0 : i32
    %c0_i32_1 = arith.constant 0 : i32
    return %arg1, %c0_i32, %c0_i32_0 : i32, i32, i32
  }
  func.func @transform_3(%arg0: i32, %arg1: i32) -> (i32, i32, i32, i32) {
    %c0_i32 = arith.constant 0 : i32
    %c0_i32_0 = arith.constant 0 : i32
    %c0_i32_1 = arith.constant 0 : i32
    %c0_i32_2 = arith.constant 0 : i32
    return %arg1, %c0_i32, %c0_i32_0, %c0_i32_1 : i32, i32, i32, i32
  }
  func.func @transform_4(%arg0: i32, %arg1: i32) -> (i32, i32, i32, i32) {
    %c0_i32 = arith.constant 0 : i32
    %c0_i32_0 = arith.constant 0 : i32
    %c0_i32_1 = arith.constant 0 : i32
    %c0_i32_2 = arith.constant 0 : i32
    return %arg1, %c0_i32, %c0_i32_0, %c0_i32_1 : i32, i32, i32, i32
  }
  func.func @transform_5(%arg0: i32, %arg1: i32) -> (i32, i32, i32) {
    %c0_i32 = arith.constant 0 : i32
    %c0_i32_0 = arith.constant 0 : i32
    %c0_i32_1 = arith.constant 0 : i32
    return %arg1, %c0_i32, %c0_i32_0 : i32, i32, i32
  }
  func.func @transform_6(%arg0: i32, %arg1: i32) -> (i32, i32, i32) {
    %c0_i32 = arith.constant 0 : i32
    %c0_i32_0 = arith.constant 0 : i32
    %c0_i32_1 = arith.constant 0 : i32
    return %arg1, %c0_i32, %c0_i32_0 : i32, i32, i32
  }
  func.func @transform_7(%arg0: i32, %arg1: i32) -> (i32, i32, i32) {
    %c0_i32 = arith.constant 0 : i32
    %c0_i32_0 = arith.constant 0 : i32
    %c0_i32_1 = arith.constant 0 : i32
    return %arg1, %c0_i32, %c0_i32_0 : i32, i32, i32
  }
  func.func @transform_8(%arg0: i32, %arg1: i32) -> (i32, i32, i32) {
    %c0_i32 = arith.constant 0 : i32
    %c0_i32_0 = arith.constant 0 : i32
    %c0_i32_1 = arith.constant 0 : i32
    return %arg1, %c0_i32, %c0_i32_0 : i32, i32, i32
  }
  func.func @transform_9(%arg0: i32, %arg1: i32) -> (i32, i32, i32) {
    %c0_i32 = arith.constant 0 : i32
    %c0_i32_0 = arith.constant 0 : i32
    %c0_i32_1 = arith.constant 0 : i32
    return %arg1, %c0_i32, %c0_i32_0 : i32, i32, i32
  }
  func.func @transform_10(%arg0: i32, %arg1: i32) -> (i32, i32, i32) {
    %c0_i32 = arith.constant 0 : i32
    %c0_i32_0 = arith.constant 0 : i32
    %c0_i32_1 = arith.constant 0 : i32
    return %arg1, %c0_i32, %c0_i32_0 : i32, i32, i32
  }
  func.func @transform_11(%arg0: i32, %arg1: i32) -> (i32, i32, i32) {
    %c0_i32 = arith.constant 0 : i32
    %c0_i32_0 = arith.constant 0 : i32
    %c0_i32_1 = arith.constant 0 : i32
    return %arg1, %c0_i32, %c0_i32_0 : i32, i32, i32
  }
  func.func @transform_12(%arg0: i32, %arg1: i32) -> (i32, i32, i32) {
    %c0_i32 = arith.constant 0 : i32
    %c0_i32_0 = arith.constant 0 : i32
    %c0_i32_1 = arith.constant 0 : i32
    return %arg0, %c0_i32, %c0_i32_0 : i32, i32, i32
  }
}

</mosaic_0001>

<bundles_post_ra>
// kernel: tpu_custom_call.1
= control target key start
LH: loop header
LB: loop body
LE: loop exit
PB: predicated region body
PF: predicated region fallthrough
CT: control target
= control target key end

     0   :  { %s2598_s0 = inlined_call_operand.vmem [shape: f32[2,8,32], index: 0, kind: input, shape index: {}]   ;;  %s2599_s1 = inlined_call_operand.vmem [shape: f32[2,1,32], index: 1, kind: input, shape index: {}]   ;;  %s2600_s2 = inlined_call_operand.vmem [shape: f32[2,1,32], index: 2, kind: input, shape index: {}]   ;;  %s2601_s3 = inlined_call_operand.vmem [shape: bf16[2,12,32,16], index: 3, kind: input, shape index: {}]   ;;  %s2602_s4 = inlined_call_operand.vmem [shape: bf16[2,4,16,32], index: 4, kind: input, shape index: {}]   ;;  %s2603_s5 = inlined_call_operand.vmem [shape: f32[2,1,32], index: 5, kind: input, shape index: {}]   ;;  %s2604_s6 = inlined_call_operand.vmem [shape: f32[2,1,32], index: 6, kind: input, shape index: {}]   ;;  %s2605_s7 = inlined_call_operand.vmem [shape: f32[2,1,32], index: 7, kind: input, shape index: {}]   ;;  %s2606_s8 = inlined_call_operand.vmem [shape: bf16[2,32,64], index: 8, kind: input, shape index: {}]   ;;  %s2607_s9 = inlined_call_operand.vmem [shape: f32[2,1,64], index: 9, kind: input, shape index: {}]   ;;  %s2608_s10 = inlined_call_operand.vmem [shape: bf16[2,64,32], index: 10, kind: input, shape index: {}]   ;;  %s2609_s11 = inlined_call_operand.vmem [shape: f32[2,1,32], index: 11, kind: input, shape index: {}]   ;;  %s2610_s12 = inlined_call_operand.hbm [shape: f32[2,8,32], index: 12, kind: output, shape index: {}]  }
   0x1   :  { %2626 = sst [smem:[#allocation19_spill]] %s2598_s0 }
   0x2   :  { %2627 = sst [smem:[#allocation20_spill]] %s2601_s3 }
   0x3   :  { %2628 = sst [smem:[#allocation21_spill]] %s2602_s4 }
   0x4   :  { %2629 = sst [smem:[#allocation22_spill]] %s2610_s12 }
   0x5   :  { %17 = vsyncpa [#allocation4], 0 }
   0x6   :  { %19 = vsyncpa [#allocation4 + $0x1], 0  ;;  %s2264_s21 = smov 0   ;;  %s2266_s22 = smov 0  }
   0x7   :  { %s2268_s23 = smov 0   ;;  %s2270_s24 = smov 0  }
   0x8   :  { %s2272_s25 = smov 0   ;;  %s2274_s26 = smov 0  }
   0x9   :  { %s2276_s27 = smov 0   ;;  %s2278_s28 = smov 0  }
   0xa LB: > { %2630 = sst [smem:[#allocation6_spill]] %s2168_s21  ;;  %s1728_s29 = sadd.s32 4294967295, %s2196_s28   ;;  %s2196_s28 = sphi %s2278_s28, %s25_s28   ;;  %s2192_s27 = sphi %s2276_s27, %s2668_s27   ;;  %s2188_s26 = sphi %s2274_s26, %s2667_s26   ;;  %s2184_s25 = sphi %s2272_s25, %s2666_s25   ;;  %s2180_s24 = sphi %s2270_s24, %s2665_s24   ;;  %s2176_s23 = sphi %s2268_s23, %s2664_s23   ;;  %s2172_s22 = sphi %s2266_s22, %s2663_s22   ;;  %s2168_s21 = sphi %s2264_s21, %s2662_s21  }
   0xb   : > { %2631 = sst [smem:[#allocation7_spill]] %s2172_s22  ;;  %s1729_s30 = sadd.s32 4294967294, %s2196_s28  }
   0xc   : > { %2632 = sst [smem:[#allocation8_spill]] %s2176_s23  ;;  %s34_s13 = sadd.s32 1, %s2188_s26 }
   0xd   : > { %2633 = sst [smem:[#allocation9_spill]] %s2180_s24  ;;  %p35_p0 = scmp.ge.s32.totalorder %s34_s13, 2 }
   0xe   : > { %2634 = sst [smem:[#allocation10_spill]] %s2184_s25  ;;  %s37_s14 = sadd.s32 1, %s2192_s27 }
   0xf   : > { %2635 = sst [smem:[#allocation11_spill]] %s2188_s26  ;;  %p366_p1 = scmp.ne.s32.totalorder %s2176_s23, %s2172_s22 }
  0x10   : > { %2636 = sst [smem:[#allocation12_spill]] %s2192_s27  ;;  %p367_p2 = scmp.eq.s32.totalorder %s1728_s29, 3 }
  0x11   : > { %2637 = sst [smem:[#allocation13_spill]] %s2196_s28  ;;  %s2670_s13 = smov (%p35_p0, %s34_s13), 0 }
  0x12   : > { %2638 = sst [smem:[#allocation14_spill]] %s2670_s13  ;;  %s2672_s14 = smov (!%p35_p0, %s37_s14), %s2192_s27 }
  0x13   : > { %p2313_p3 = por %p367_p2, %p366_p1  ;;  %p372_p4 = scmp.ne.s32.totalorder %s2172_s22, %s2168_s21 }
  0x14   : > { %p39_p5 = scmp.ge.s32.totalorder %s2672_s14, 2  ;;  %p373_p6 = scmp.eq.s32.totalorder %s1729_s30, 3 }
  0x15   : > { %s2639_s15 = scalar_select %p2313_p3, 1, 0 }
  0x16   : > { %p1732_p7 = scmp.ge.s32.totalorder %s2196_s28, 1  ;;  %p472_p8 = scmp.lt.s32.totalorder %s2196_s28, 5 }
  0x17   : > { %2640 = sst [smem:[#allocation15_spill]] %s2639_s15  ;;  %s2674_s14 = smov (%p39_p5, %s2672_s14), 0 }
  0x18   : > { %2641 = sst [smem:[#allocation16_spill]] %s2674_s14  ;;  %p2323_p9 = por %p373_p6, %p372_p4 }
  0x19   : > { %p473_p10 = pnand %p1732_p7, %p472_p8  ;;  %s353_s17 = ssub.s32 %s2192_s27, %s2674_s14 }
  0x1a   : > { %s2642_s16 = scalar_select %p2323_p9, 1, 0 }
  0x1b   : > { %s356_s18 = sadd.s32 1, %s2176_s23  ;;  %p354_p11 = scmp.eq.s32.totalorder %s353_s17, 0 }
  0x1c   : > { %2643 = sst [smem:[#allocation17_spill]] %s2642_s16  ;;  %476 = sbr.rel (%p473_p10) target bundleno = 2792 (0xae8), region = 68 }
  0x1d   : > { %s2331_s19 = scalar_select %p354_p11, %s2176_s23, %s356_s18  }
  0x1e   : > { %s2612_s20 = sand.u32 (!%p473_p10), 1, %s2172_s22   ;;  %p554_p12 = scmp.lt.s32.totalorder (!%p473_p10), %s2184_s25, 1 }
  0x1f   : > { %2644 = sst [smem:[#allocation18_spill]] %s2331_s19  ;;  %s2337_s29 = sshll.u32 (!%p473_p10), %s2612_s20, 3 }
  0x20   : > { %p558_p13 = scmp.lt.s32.totalorder (!%p473_p10), %s2180_s24, 1  ;;  %s2645_s0 = sld [smem:[#allocation19_spill]] (!%p473_p10) }
  0x21   : > { %s555_s30 = scalar_select %p554_p12, %s2184_s25, 1 }
  0x22   : > { %s2342_s13 = scalar_select %p558_p13, %s2180_s24, 1 }
  0x23   : > { %s1734_s17 = sshll.u32 %s555_s30, 3  ;;  %s2646_s3 = sld [smem:[#allocation20_spill]] }
  0x24   : > { %s1998_s28 = smul.u32 192, %s2342_s13  ;;  %s1961_s12 = sshll.u32 %s2342_s13, 5 }
  0x25   : > { %s2647_s4 = sld [smem:[#allocation21_spill]]  ;;  %s579_s23 = scalar_lea.vmem %s2604_s6, %s2342_s13 }
  0x26   : > { %s557_s20 = scalar_lea.vmem %s2645_s0, %s1734_s17  ;;  %s1962_s22 = sshll.u32 %s2342_s13, 4 }
  0x27   : > { %s590_s24 = scalar_lea.vmem %s2607_s9, %s2342_s13  ;;  %s598_s21 = scalar_lea.vmem %s2609_s11, %s2342_s13 }
  0x28   : > { %s553_s16 = scalar_lea.vmem [#allocation3], %s2337_s29  ;;  %s2648_s0 = sld [smem:[#allocation9_spill]] }
  0x29   : > { %s2364_s14 = scalar_lea.vmem %s2646_s3, %s1998_s28  ;;  %s2387_s3 = scalar_lea.vmem %s2606_s8, %s1962_s22 }
  0x2b   : > { %s2369_s26 = scalar_lea.vmem %s2647_s4, %s1961_s12  ;;  %s2392_s4 = scalar_lea.vmem %s2608_s10, %s1961_s12 }
  0x2e   : > { %p1742_p0 = scmp.ne.s32.totalorder %s2648_s0, 0 }
  0x30   : > { %603 = sbr.rel (%p1742_p0) target bundleno = 55 (0x37), region = 72 }
  0x35   : > { %v604_v0 = vld [vmem:[%s557_s20] sm:$0xff]  ;;  %vm605_vm0 = vcmask 261120  }
  0x36   : > { %606 = vst.msk [vmem:[#allocation2] sm:$0xff] %vm605_vm0, %v604_v0 }
  0x37 PF: > { %v1965_v1 = vld [vmem:[%s2364_s14 + $0x8] sm:$0xff]  ;;  %vm608_vm1 = vcmask 261120   ;;  %v1964_v3 = vld [vmem:[%s2364_s14] sm:$0xff]  ;;  %v2198_v5 = vmov 8.0   ;;  %s2649_s25 = scalar_lea.vmem %s2599_s1, %s2342_s13  ;;  %s2650_s15 = scalar_lea.vmem %s2600_s2, %s2342_s13  ;;  %vm752_vm6 = vcmask 130048   ;;  %v1974_v54 = vld [vmem:[%s2364_s14 + $0x58] sm:$0xff] }
  0x38   : > { %v1967_v2 = vld [vmem:[%s2364_s14 + $0x48] sm:$0xff]  ;;  %2078 = vrcp.f32 %v2198_v5  ;;  %692 = vmatpush.bf16.msra.mxu0 %v1965_v1  ;;  %v1966_v6 = vld [vmem:[%s2364_s14 + $0x40] sm:$0xff]  ;;  %vm773_vm7 = vcmask 64512   ;;  %v1973_v59 = vld [vmem:[%s2364_s14 + $0x50] sm:$0xff]  ;;  %vm789_vm8 = vcmask 1043456   ;;  %s2651_s30 = scalar_lea.vmem %s2603_s5, %s2342_s13  ;;  %s2652_s19 = scalar_lea.vmem %s2605_s7, %s2342_s13  ;;  %vm1507_vm0 = vcmask 523264  }
  0x39   : > { %717 = vmatpush.bf16.msra.mxu1 %v1967_v2  ;;  %v2071_v38 = vld [vmem:[%s2649_s25] ss:$0 sm:$0xff]  ;;  %v1969_v52 = vld [vmem:[%s2364_s14 + $0x88] sm:$0xff]  ;;  %v1972_v60 = vld [vmem:[%s2364_s14 + $0x18] sm:$0xff] }
  0x3a   : > { %v2072_v41 = vld [vmem:[%s2650_s15] ss:$0 sm:$0xff]  ;;  %742 = vmatpush.bf16.msra.mxu2 %v1969_v52  ;;  %v1971_v61 = vld [vmem:[%s2364_s14 + $0x10] sm:$0xff] }
  0x3b   : > { %v1968_v53 = vld [vmem:[%s2364_s14 + $0x80] sm:$0xff] }
  0x3c   : > { %693 = vmatpush.bf16.msra.mxu0 %v1964_v3 }
  0x3d   : > { %v2403_v4 = vld [vmem:[#allocation2] sm:$0xff]  ;;  %718 = vmatpush.bf16.msra.mxu1 %v1966_v6 }
  0x3e   : > { %v609_v7 = vsel %vm608_vm1, %v2403_v4, 0.0  ;;  %v2079_v10 = vpop.eup %2078  ;;  %743 = vmatpush.bf16.msra.mxu2 %v1968_v53 }
  0x3f   : > { %v610_v8 = vrot.slane %v609_v7, 4  ;;  %v617_v12 = vmul.f32 8.0, %v2079_v10  ;;  %vm621_vm2 = vweird.f32 %v2079_v10 }
  0x41   : > { %v611_v9 = vadd.f32 %v610_v8, %v609_v7  ;;  %v618_v14 = vsub.f32 1.0, %v617_v12  ;;  %842 = vmatpush.bf16.msrb.mxu1 %v1972_v60 }
  0x42   : > { %867 = vmatpush.bf16.msrb.mxu2 %v1974_v54 }
  0x43   : > { %v612_v11 = vrot.slane %v611_v9, 2  ;;  %v619_v16 = vmul.f32 %v2079_v10, %v618_v14  ;;  %v1976_v14 = vld [vmem:[%s2364_s14 + $0x98] sm:$0xff] }
  0x45   : > { %v613_v13 = vadd.f32 %v612_v11, %v611_v9  ;;  %v620_v18 = vadd.f32 %v2079_v10, %v619_v16  ;;  %843 = vmatpush.bf16.msrb.mxu1 %v1971_v61 }
  0x46   : > { %868 = vmatpush.bf16.msrb.mxu2 %v1973_v59 }
  0x47   : > { %v614_v15 = vrot.slane %v613_v13, 1  ;;  %v2408_v19 = vsel %vm621_vm2, %v2079_v10, %v620_v18 }
  0x49   : > { %v615_v17 = vadd.f32 %v614_v15, %v613_v13  ;;  %v1975_v15 = vld [vmem:[%s2364_s14 + $0x90] sm:$0xff] }
  0x4b   : > { %v623_v20 = vmul.f32 %v2408_v19, %v615_v17 }
  0x4d   : > { %v624_v21 = vsub.f32 %v2403_v4, %v623_v20 }
  0x4f   : > { %v625_v22 = vmul.f32 %v624_v21, %v624_v21 }
  0x51   : > { %v626_v23 = vsel %vm608_vm1, %v625_v22, 0.0  ;;  %v1970_v22 = vld [vmem:[%s2369_s26] sm:$0xff] }
  0x52   : > { %v627_v24 = vrot.slane %v626_v23, 4 }
  0x54   : > { %v628_v25 = vadd.f32 %v627_v24, %v626_v23 }
  0x56   : > { %v629_v26 = vrot.slane %v628_v25, 2 }
  0x58   : > { %v630_v27 = vadd.f32 %v629_v26, %v628_v25 }
  0x5a   : > { %v631_v28 = vrot.slane %v630_v27, 1 }
  0x5c   : > { %v632_v29 = vadd.f32 %v631_v28, %v630_v27 }
  0x5e   : > { %v633_v30 = vmul.f32 %v632_v29, %v2408_v19 }
  0x60   : > { %v634_v31 = vadd.f32 1e-06, %v633_v30 }
  0x62   : > { %2080 = vrsqrt.f32 %v634_v31  ;;  %vm641_vm3 = vweird.f32 %v634_v31 }
  0x68   : > { %v2081_v32 = vpop.eup %2080 }
  0x69   : > { %v636_v33 = vmul.f32 %v2081_v32, %v634_v31  ;;  %vm642_vm4 = vweird.f32 %v2081_v32 }
  0x6a   : > { %vm643_vm5 = vmor %vm641_vm3, %vm642_vm4 }
  0x6b   : > { %v637_v34 = vmul.f32 %v2081_v32, %v636_v33 }
  0x6d   : > { %v638_v35 = vmul.f32 0.5, %v637_v34 }
  0x6f   : > { %v639_v36 = vsub.f32 1.5, %v638_v35 }
  0x71   : > { %v640_v37 = vmul.f32 %v2081_v32, %v639_v36 }
  0x73   : > { %v644_v39 = vsel %vm643_vm5, %v2081_v32, %v640_v37 }
  0x74   : > { %v645_v40 = vmul.f32 %v644_v39, %v624_v21 }
  0x76   : > { %v650_v42 = vmul.f32 %v2071_v38, %v645_v40 }
  0x78   : > { %v655_v43 = vadd.f32 %v2072_v41, %v650_v42  ;;  %v1981_v41 = vld [vmem:[%s2364_s14 + $0x68] sm:$0xff]  ;;  %v1980_v42 = vld [vmem:[%s2364_s14 + $0x60] sm:$0xff] }
  0x7a   : > { %v2424_v44 = vpack.c.bf16 %v655_v43, %v655_v43  ;;  %v1979_v43 = vld [vmem:[%s2364_s14 + $0x28] sm:$0xff] }
  0x7c   : > { %1759 = vmatmul.msk.bf16.vlgmr.msra.gmra.mxu0 %vm608_vm1, %v2424_v44  ;;  %1768 = vmatmul.msk.bf16.vlgmr.msra.gmra.mxu1 %vm608_vm1, %v2424_v44 }
  0x7d   : > { %1777 = vmatmul.msk.bf16.vlgmr.msra.gmra.mxu2 %vm608_vm1, %v2424_v44 }
  0x8c   : > { %1800 = vmatmul.msk.bf16.vlgmr.msrb.gmra.mxu1 %vm608_vm1, %v2424_v44 }
  0x8d   : > { %1809 = vmatmul.msk.bf16.vlgmr.msrb.gmra.mxu2 %vm608_vm1, %v2424_v44 }
  0xf9   : > { %v695_v45 = vpop.f32.mrf.mxu0  ;;  %v720_v46 = vpop.f32.mrf.mxu1 }
  0xfa   : > { %v750_v47 = vpack.c.bf16 %v720_v46, %v720_v46  ;;  %v749_v49 = vpack.c.bf16 %v695_v45, %v695_v45  ;;  %v1978_v45 = vld [vmem:[%s2364_s14 + $0x20] sm:$0xff] }
  0xfc   : > { %v757_v48 = vsel %vm752_vm6, %v750_v47, 0 }
  0xfd   : > { %766 = vmatpush.bf16.xpose.msra.mxu3 %v757_v48 }
 0x100   : > { %v745_v62 = vpop.f32.mrf.mxu2 }
 0x101   : > { %v697_v50 = vpop.f32.mrf.mxu0  ;;  %v722_v51 = vpop.f32.mrf.mxu1  ;;  %v751_v6 = vpack.c.bf16 %v745_v62, %v745_v62  ;;  %v1983_v62 = vld [vmem:[%s2364_s14 + $0xa8] sm:$0xff] }
 0x102   : > { %v1977_v50 = vld [vmem:[%s2369_s26 + $0x8] sm:$0xff] }
 0x103   : > { %v791_v7 = vsel %vm789_vm8, %v751_v6, 0  ;;  %973 = vmatpush.bf16.msra.mxu2 %v1977_v50  ;;  %v1988_v6 = vld [vmem:[%s2364_s14 + $0x78] sm:$0xff] }
 0x104   : > { %1778 = vmatmul.msk.bf16.vlgmr.msra.gmra.mxu3 %vm752_vm6, %v749_v49  ;;  %800 = vmatpush.bf16.msrb.mxu0 %v791_v7 }
 0x105   : > { %892 = vmatpush.bf16.msrb.mxu3 %v1976_v14 }
 0x107   : > { %1084 = vmatpush.bf16.msrb.mxu2 %v1983_v62  ;;  %v2073_v62 = vld [vmem:[%s2651_s30] ss:$0 sm:$0xff] }
 0x108   : > { %v747_v2 = vpop.f32.mrf.mxu2 }
 0x109   : > { %v845_v11 = vpop.f32.mrf.mxu1  ;;  %893 = vmatpush.bf16.msrb.mxu3 %v1975_v15 }
 0x10a   : > { %v899_v21 = vpack.c.bf16 %v845_v11, %v845_v11 }
 0x10d   : > { %995 = vmatpush.bf16.msra.mxu3 %v1970_v22 }
 0x110   : > { %v870_v8 = vpop.f32.mrf.mxu2 }
 0x111   : > { %v900_v9 = vpack.c.bf16 %v870_v8, %v870_v8  ;;  %v847_v13 = vpop.f32.mrf.mxu1 }
 0x113   : > { %v906_v10 = vsel %vm752_vm6, %v900_v9, 0 }
 0x114   : > { %915 = vmatpush.bf16.xpose.msra.mxu0 %v906_v10  ;;  %1818 = vmatmul.msk.bf16.vlgmr.msrb.gmra.mxu3 %vm608_vm1, %v2424_v44 }
 0x118   : > { %v872_v12 = vpop.f32.mrf.mxu2 }
 0x187   : > { %v768_v55 = vpop.f32.mrf.mxu3 }
 0x188   : > { %v772_v56 = vmul.f32 0.25, %v768_v55 }
 0x18a   : > { %v774_v57 = vsel %vm773_vm7, %v772_v56, -inf }
 0x18b   : > { %775 = vmax.xlane.f32.xlu0 %v774_v57 }
 0x18f   : > { %v770_v58 = vpop.f32.mrf.mxu3 }
 0x197   : > { %v895_v23 = vpop.f32.mrf.mxu3 }
 0x198   : > { %v901_v25 = vpack.c.bf16 %v895_v23, %v895_v23 }
 0x19a   : > { %v938_v27 = vsel %vm789_vm8, %v901_v25, 0 }
 0x19b   : > { %947 = vmatpush.bf16.msra.mxu1 %v938_v27 }
 0x19f   : > { %v897_v28 = vpop.f32.mrf.mxu3  ;;  %1059 = vmatpush.bf16.msrb.mxu1 %v1981_v41 }
 0x1a3   : > { %1060 = vmatpush.bf16.msrb.mxu1 %v1980_v42 }
 0x1fe   : > { %v776_v63 = vpop.xlane.xlu0 %775 }
 0x1ff   : > { %v777_v0 = vsub.f32 %v772_v56, %v776_v63  ;;  %v1982_v63 = vld [vmem:[%s2364_s14 + $0xa0] sm:$0xff] }
 0x200   : > { %1085 = vmatpush.bf16.msrb.mxu2 %v1982_v63 }
 0x201   : > { %v778_v1 = vmul.f32 1.442695, %v777_v0 }
 0x203   : > { %2082 = vpow2.f32 %v778_v1 }
 0x209   : > { %v2083_v3 = vpop.eup %2082 }
 0x20a   : > { %v780_v5 = vsel %vm773_vm7, %v2083_v3, 0.0 }
 0x20b   : > { %781 = vadd.xlane.f32.xlu0 %v780_v5 }
 0x27e   : > { %v782_v16 = vpop.xlane.xlu0 %781 }
 0x27f   : > { %2084 = vrcp.f32 %v782_v16  ;;  %v1987_v16 = vld [vmem:[%s2364_s14 + $0x70] sm:$0xff] }
 0x285   : > { %v2085_v17 = vpop.eup %2084 }
 0x286   : > { %v784_v18 = vmul.f32 %v2085_v17, %v2083_v3  ;;  %v1986_v17 = vld [vmem:[%s2364_s14 + $0x38] sm:$0xff] }
 0x288   : > { %v785_v20 = vpack.c.bf16 %v784_v18, %v784_v18  ;;  %v1985_v18 = vld [vmem:[%s2364_s14 + $0x30] sm:$0xff] }
 0x28a   : > { %1779 = vmatmul.msk.bf16.vlgmr.msrb.gmra.mxu0 %vm773_vm7, %v785_v20  ;;  %v1984_v20 = vld [vmem:[%s2369_s26 + $0x10] sm:$0xff] }
 0x28b   : > { %1034 = vmatpush.bf16.msrb.mxu0 %v1979_v43 }
 0x28f   : > { %1035 = vmatpush.bf16.msrb.mxu0 %v1978_v45 }
 0x29a   : > { %1819 = vmatmul.msk.bf16.vlgmr.msra.gmra.mxu0 %vm752_vm6, %v899_v21 }
 0x2aa   : > { %1853 = vmatmul.msk.bf16.vlgmr.msrb.gmra.mxu0 %vm608_vm1, %v2424_v44 }
 0x307   : > { %v802_v24 = vpop.f32.mrf.mxu0 }
 0x308   : > { %v806_v26 = vpack.c.bf16 %v802_v24, %v802_v24 }
 0x30a   : > { %1832 = vmatmul.msk.bf16.vlgmr.msra.gmra.mxu3 %vm752_vm6, %v806_v26 }
 0x30f   : > { %v804_v29 = vpop.f32.mrf.mxu0 }
 0x317   : > { %v917_v30 = vpop.f32.mrf.mxu0 }
 0x318   : > { %v921_v31 = vmul.f32 0.25, %v917_v30 }
 0x31a   : > { %v922_v32 = vsel %vm773_vm7, %v921_v31, -inf }
 0x31b   : > { %923 = vmax.xlane.f32.xlu1 %v922_v32 }
 0x31f   : > { %v919_v33 = vpop.f32.mrf.mxu0 }
 0x327   : > { %v1037_v51 = vpop.f32.mrf.mxu0 }
 0x328   : > { %v1091_v59 = vpack.c.bf16 %v1037_v51, %v1037_v51 }
 0x32f   : > { %v1039_v52 = vpop.f32.mrf.mxu0 }
 0x38d   : > { %v2458_v34 = vpop.f32.mrf.mxu3 }
 0x38e   : > { %v924_v35 = vpop.xlane.xlu1 %923 }
 0x38f   : > { %v925_v36 = vsub.f32 %v921_v31, %v924_v35 }
 0x391   : > { %v926_v37 = vmul.f32 1.442695, %v925_v36  ;;  %v1990_v36 = vld [vmem:[%s2364_s14 + $0xb8] sm:$0xff] }
 0x393   : > { %2086 = vpow2.f32 %v926_v37  ;;  %v1989_v37 = vld [vmem:[%s2364_s14 + $0xb0] sm:$0xff] }
 0x395   : > { %v999_v38 = vpop.f32.mrf.mxu3 }
 0x399   : > { %v2087_v39 = vpop.eup %2086 }
 0x39a   : > { %v928_v40 = vsel %vm773_vm7, %v2087_v39, 0.0 }
 0x39b   : > { %929 = vadd.xlane.f32.xlu1 %v928_v40 }
 0x40e   : > { %v930_v46 = vpop.xlane.xlu1 %929 }
 0x40f   : > { %2088 = vrcp.f32 %v930_v46 }
 0x415   : > { %v2089_v47 = vpop.eup %2088 }
 0x416   : > { %v932_v48 = vmul.f32 %v2089_v47, %v2087_v39 }
 0x418   : > { %v933_v49 = vpack.c.bf16 %v932_v48, %v932_v48 }
 0x41a   : > { %1820 = vmatmul.msk.bf16.vlgmr.msra.gmra.mxu1 %vm773_vm7, %v933_v49 }
 0x41b   : > { %1165 = vmatpush.bf16.msra.mxu1 %v1984_v20  ;;  %v1992_v20 = vld [vmem:[%s2387_s3] sm:$0xff] }
 0x42a   : > { %1862 = vmatmul.msk.bf16.vlgmr.msrb.gmra.mxu1 %vm608_vm1, %v2424_v44 }
 0x497   : > { %v949_v53 = vpop.f32.mrf.mxu1 }
 0x498   : > { %v953_v54 = vpack.c.bf16 %v949_v53, %v949_v53 }
 0x49a   : > { %1827 = vmatmul.msk.bf16.vlgmr.msra.gmra.mxu2 %vm752_vm6, %v953_v54  ;;  %v1991_v54 = vld [vmem:[%s2369_s26 + $0x18] sm:$0xff] }
 0x49b   : > { %1205 = vmatpush.bf16.msra.mxu2 %v1986_v17 }
 0x49f   : > { %v951_v55 = vpop.f32.mrf.mxu1  ;;  %1206 = vmatpush.bf16.msra.mxu2 %v1985_v18 }
 0x4a7   : > { %v1062_v56 = vpop.f32.mrf.mxu1 }
 0x4a8   : > { %v1092_v57 = vpack.c.bf16 %v1062_v56, %v1062_v56 }
 0x4aa   : > { %v1098_v58 = vsel %vm752_vm6, %v1092_v57, 0  ;;  %1871 = vmatmul.msk.bf16.vlgmr.msrb.gmra.mxu2 %vm608_vm1, %v2424_v44 }
 0x4ab   : > { %1107 = vmatpush.bf16.xpose.msrb.mxu3 %v1098_v58 }
 0x4af   : > { %v1064_v60 = vpop.f32.mrf.mxu1 }
 0x4b2   : > { %1872 = vmatmul.msk.bf16.vlgmr.msrb.gmra.mxu3 %vm752_vm6, %v1091_v59 }
 0x4b3   : > { %1230 = vmatpush.bf16.msra.mxu3 %v1988_v6 }
 0x4b7   : > { %1231 = vmatpush.bf16.msra.mxu3 %v1987_v16  ;;  %v1993_v16 = vld [vmem:[%s2387_s3 + $0x8] sm:$0xff] }
 0x4ba   : > { %1901 = vmatmul.msk.bf16.vlgmr.msra.gmra.mxu2 %vm608_vm1, %v2424_v44 }
 0x4bb   : > { %1336 = vmatpush.bf16.msrb.mxu3 %v1991_v54 }
 0x4c2   : > { %1910 = vmatmul.msk.bf16.vlgmr.msra.gmra.mxu3 %vm608_vm1, %v2424_v44 }
 0x51d   : > { %v975_v61 = vpop.f32.mrf.mxu2 }
 0x51e   : > { %v998_v38 = vadd.f32 %v2458_v34, %v975_v61 }
 0x525   : > { %v977_v0 = vpop.f32.mrf.mxu2 }
 0x52d   : > { %v1087_v7 = vpop.f32.mrf.mxu2 }
 0x52e   : > { %v1093_v8 = vpack.c.bf16 %v1087_v7, %v1087_v7 }
 0x530   : > { %v1130_v10 = vsel %vm789_vm8, %v1093_v8, 0 }
 0x531   : > { %1139 = vmatpush.bf16.msra.mxu0 %v1130_v10 }
 0x535   : > { %v1109_v1 = vpop.f32.mrf.mxu3  ;;  %v1089_v13 = vpop.f32.mrf.mxu2  ;;  %1255 = vmatpush.bf16.msrb.mxu0 %v1990_v36 }
 0x536   : > { %v1113_v2 = vmul.f32 0.25, %v1109_v1 }
 0x538   : > { %v1114_v3 = vsel %vm773_vm7, %v1113_v2, -inf }
 0x539   : > { %1115 = vmax.xlane.f32.xlu2 %v1114_v3  ;;  %1256 = vmatpush.bf16.msrb.mxu0 %v1989_v37 }
 0x53d   : > { %v1111_v5 = vpop.f32.mrf.mxu3  ;;  %v1208_v29 = vpop.f32.mrf.mxu2 }
 0x53e   : > { %v1262_v35 = vpack.c.bf16 %v1208_v29, %v1208_v29 }
 0x545   : > { %v1233_v25 = vpop.f32.mrf.mxu3  ;;  %v1210_v30 = vpop.f32.mrf.mxu2 }
 0x546   : > { %v1263_v26 = vpack.c.bf16 %v1233_v25, %v1233_v25 }
 0x548   : > { %v1269_v27 = vsel %vm752_vm6, %v1263_v26, 0 }
 0x549   : > { %1278 = vmatpush.bf16.xpose.msrb.mxu1 %v1269_v27 }
 0x54d   : > { %v1235_v28 = vpop.f32.mrf.mxu3 }
 0x5ac   : > { %v1116_v9 = vpop.xlane.xlu2 %1115 }
 0x5ad   : > { %v1117_v11 = vsub.f32 %v1113_v2, %v1116_v9 }
 0x5af   : > { %v1118_v12 = vmul.f32 1.442695, %v1117_v11 }
 0x5b1   : > { %2090 = vpow2.f32 %v1118_v12 }
 0x5b7   : > { %v2091_v14 = vpop.eup %2090 }
 0x5b8   : > { %v1120_v15 = vsel %vm773_vm7, %v2091_v14, 0.0 }
 0x5b9   : > { %1121 = vadd.xlane.f32.xlu2 %v1120_v15 }
 0x62c   : > { %v1122_v21 = vpop.xlane.xlu2 %1121 }
 0x62d   : > { %2092 = vrcp.f32 %v1122_v21 }
 0x633   : > { %v2093_v22 = vpop.eup %2092 }
 0x634   : > { %v1124_v23 = vmul.f32 %v2093_v22, %v2091_v14 }
 0x636   : > { %v1125_v24 = vpack.c.bf16 %v1124_v23, %v1124_v23 }
 0x638   : > { %1873 = vmatmul.msk.bf16.vlgmr.msra.gmra.mxu0 %vm773_vm7, %v1125_v24 }
 0x639   : > { %1419 = vmatpush.bf16.msra.mxu0 %v1993_v16 }
 0x63d   : > { %1420 = vmatpush.bf16.msra.mxu0 %v1992_v20 }
 0x648   : > { %1919 = vmatmul.msk.bf16.vlgmr.msrb.gmra.mxu0 %vm608_vm1, %v2424_v44 }
 0x6b5   : > { %v1141_v31 = vpop.f32.mrf.mxu0 }
 0x6b6   : > { %v1145_v32 = vpack.c.bf16 %v1141_v31, %v1141_v31 }
 0x6b8   : > { %1880 = vmatmul.msk.bf16.vlgmr.msra.gmra.mxu1 %vm752_vm6, %v1145_v32  ;;  %v2074_v32 = vld [vmem:[%s579_s23] ss:$0 sm:$0xff] }
 0x6bd   : > { %v1143_v33 = vpop.f32.mrf.mxu0 }
 0x6c5   : > { %v1258_v47 = vpop.f32.mrf.mxu0 }
 0x6c6   : > { %v1264_v48 = vpack.c.bf16 %v1258_v47, %v1258_v47  ;;  %v1997_v47 = vld [vmem:[%s2392_s4 + $0x18] sm:$0xff] }
 0x6c7   : > { %1515 = vmatpush.bf16.msra.mxu1 %v1997_v47 }
 0x6c8   : > { %1920 = vmatmul.msk.bf16.vlgmr.msrb.gmra.mxu1 %vm752_vm6, %v1262_v35  ;;  %v1301_v49 = vsel %vm789_vm8, %v1264_v48, 0  ;;  %v2075_v35 = vld [vmem:[%s2652_s19] ss:$0 sm:$0xff] }
 0x6c9   : > { %1310 = vmatpush.bf16.msrb.mxu2 %v1301_v49 }
 0x6cd   : > { %v1260_v50 = vpop.f32.mrf.mxu0 }
 0x735   : > { %v1167_v39 = vpop.f32.mrf.mxu1 }
 0x736   : > { %v1171_v40 = vadd.f32 %v1167_v39, %v998_v38  ;;  %v2076_v39 = vld [vmem:[%s590_s24] ss:$0 sm:$0xff]  ;;  %s2653_s24 = sld [smem:[#allocation9_spill]] }
 0x73c   : > { %p1956_p1 = scmp.ne.s32.totalorder %s2653_s24, 1 }
 0x73d   : > { %v1169_v41 = vpop.f32.mrf.mxu1 }
 0x745   : > { %v1280_v42 = vpop.f32.mrf.mxu1 }
 0x746   : > { %v1284_v43 = vmul.f32 0.25, %v1280_v42 }
 0x748   : > { %v1285_v45 = vsel %vm773_vm7, %v1284_v43, -inf }
 0x749   : > { %1286 = vmax.xlane.f32.xlu0 %v1285_v45 }
 0x74d   : > { %v1282_v46 = vpop.f32.mrf.mxu1 }
 0x7bc   : > { %v1287_v34 = vpop.xlane.xlu0 %1286 }
 0x7bd   : > { %v1288_v51 = vsub.f32 %v1284_v43, %v1287_v34 }
 0x7bf   : > { %v1289_v52 = vmul.f32 1.442695, %v1288_v51  ;;  %v1996_v51 = vld [vmem:[%s2392_s4 + $0x10] sm:$0xff] }
 0x7c0   : > { %1516 = vmatpush.bf16.msra.mxu1 %v1996_v51 }
 0x7c1   : > { %2094 = vpow2.f32 %v1289_v52 }
 0x7c7   : > { %v2095_v44 = vpop.eup %2094 }
 0x7c8   : > { %v1291_v53 = vsel %vm773_vm7, %v2095_v44, 0.0 }
 0x7c9   : > { %1292 = vadd.xlane.f32.xlu1 %v1291_v53 }
 0x83c   : > { %v1293_v55 = vpop.xlane.xlu1 %1292 }
 0x83d   : > { %2096 = vrcp.f32 %v1293_v55  ;;  %v1995_v55 = vld [vmem:[%s2392_s4 + $0x8] sm:$0xff] }
 0x83e   : > { %1517 = vmatpush.bf16.msra.mxu1 %v1995_v55 }
 0x843   : > { %v2097_v56 = vpop.eup %2096 }
 0x844   : > { %v1295_v57 = vmul.f32 %v2097_v56, %v2095_v44 }
 0x846   : > { %v1296_v58 = vpack.c.bf16 %v1295_v57, %v1295_v57 }
 0x848   : > { %1921 = vmatmul.msk.bf16.vlgmr.msrb.gmra.mxu2 %vm773_vm7, %v1296_v58 }
 0x8cb   : > { %v1312_v59 = vpop.f32.mrf.mxu2 }
 0x8cc   : > { %v1316_v60 = vpack.c.bf16 %v1312_v59, %v1312_v59  ;;  %v1994_v59 = vld [vmem:[%s2392_s4] sm:$0xff] }
 0x8cd   : > { %1518 = vmatpush.bf16.msra.mxu1 %v1994_v59 }
 0x8ce   : > { %1928 = vmatmul.msk.bf16.vlgmr.msrb.gmra.mxu3 %vm752_vm6, %v1316_v60 }
 0x8d3   : > { %v1314_v61 = vpop.f32.mrf.mxu2 }
 0x951   : > { %v1338_v63 = vpop.f32.mrf.mxu3 }
 0x952   : > { %v1342_v0 = vadd.f32 %v1338_v63, %v1171_v40 }
 0x954   : > { %v1347_v1 = vadd.f32 %v2073_v62, %v1342_v0 }
 0x956   : > { %v2511_v2 = vadd.f32 %v1347_v1, %v2403_v4 }
 0x958   : > { %v1349_v3 = vsel %vm608_vm1, %v2511_v2, 0.0 }
 0x959   : > { %v1350_v5 = vrot.slane %v1349_v3, 4  ;;  %v1340_v6 = vpop.f32.mrf.mxu3 }
 0x95b   : > { %v1351_v7 = vadd.f32 %v1350_v5, %v1349_v3 }
 0x95d   : > { %v1352_v8 = vrot.slane %v1351_v7, 2 }
 0x95f   : > { %v1353_v9 = vadd.f32 %v1352_v8, %v1351_v7 }
 0x961   : > { %v1354_v10 = vrot.slane %v1353_v9, 1 }
 0x963   : > { %v1355_v11 = vadd.f32 %v1354_v10, %v1353_v9 }
 0x965   : > { %v1356_v12 = vmul.f32 %v1355_v11, %v2408_v19 }
 0x967   : > { %v1357_v13 = vsub.f32 %v2511_v2, %v1356_v12 }
 0x969   : > { %v1358_v14 = vmul.f32 %v1357_v13, %v1357_v13 }
 0x96b   : > { %v1359_v15 = vsel %vm608_vm1, %v1358_v14, 0.0 }
 0x96c   : > { %v1360_v4 = vrot.slane %v1359_v15, 4 }
 0x96e   : > { %v1361_v17 = vadd.f32 %v1360_v4, %v1359_v15 }
 0x970   : > { %v1362_v18 = vrot.slane %v1361_v17, 2 }
 0x972   : > { %v1363_v21 = vadd.f32 %v1362_v18, %v1361_v17 }
 0x974   : > { %v1364_v22 = vrot.slane %v1363_v21, 1 }
 0x976   : > { %v1365_v23 = vadd.f32 %v1364_v22, %v1363_v21 }
 0x978   : > { %v1366_v24 = vmul.f32 %v1365_v23, %v2408_v19 }
 0x97a   : > { %v1367_v25 = vadd.f32 1e-06, %v1366_v24  ;;  %v2077_v24 = vld [vmem:[%s598_s21] ss:$0 sm:$0xff] }
 0x97c   : > { %2098 = vrsqrt.f32 %v1367_v25  ;;  %vm1374_vm10 = vweird.f32 %v1367_v25 }
 0x982   : > { %v2099_v26 = vpop.eup %2098 }
 0x983   : > { %v1369_v27 = vmul.f32 %v2099_v26, %v1367_v25  ;;  %vm1375_vm9 = vweird.f32 %v2099_v26 }
 0x984   : > { %vm1376_vm11 = vmor %vm1374_vm10, %vm1375_vm9 }
 0x985   : > { %v1370_v28 = vmul.f32 %v2099_v26, %v1369_v27 }
 0x987   : > { %v1371_v29 = vmul.f32 0.5, %v1370_v28 }
 0x989   : > { %v1372_v30 = vsub.f32 1.5, %v1371_v29 }
 0x98b   : > { %v1373_v31 = vmul.f32 %v2099_v26, %v1372_v30 }
 0x98d   : > { %v1377_v33 = vsel %vm1376_vm11, %v2099_v26, %v1373_v31 }
 0x98e   : > { %v1378_v19 = vmul.f32 %v1377_v33, %v1357_v13 }
 0x990   : > { %v1383_v36 = vmul.f32 %v2074_v32, %v1378_v19 }
 0x992   : > { %v1388_v37 = vadd.f32 %v2075_v35, %v1383_v36 }
 0x994   : > { %v1389_v38 = vpack.c.bf16 %v1388_v37, %v1388_v37 }
 0x996   : > { %1937 = vmatmul.msk.bf16.vlgmr.msra.gmra.mxu0 %vm608_vm1, %v1389_v38 }
 0xa13   : > { %v1422_v40 = vpop.f32.mrf.mxu0 }
 0xa14   : > { %v1423_v41 = vadd.f32 %v2076_v39, %v1422_v40 }
 0xa16   : > { %v1427_v42 = vmul.f32 0.70710677, %v1423_v41  ;;  %v1426_v20 = vmul.f32 0.5, %v1423_v41 }
 0xa18   : > { %v1428_v43 = vmul.f32 %v1427_v42, %v1427_v42 }
 0xa1a   : > { %v1429_v45 = vmin.f32 %v1428_v43, 16.0 }
 0xa1b   : > { %v1424_v46 = vpop.f32.mrf.mxu0 }
 0xa1c   : > { %v1430_v48 = vmul.f32 2.1237322e-06, %v1429_v45  ;;  %v1441_v49 = vmul.f32 3.8918573e-05, %v1429_v45 }
 0xa1e   : > { %v1431_v50 = vadd.f32 0.00028619796, %v1430_v48  ;;  %v1442_v34 = vadd.f32 0.001143296, %v1441_v49 }
 0xa20   : > { %v1432_v52 = vmul.f32 %v1431_v50, %v1429_v45  ;;  %v1443_v44 = vmul.f32 %v1442_v34, %v1429_v45 }
 0xa22   : > { %v1444_v53 = vadd.f32 0.014752088, %v1443_v44  ;;  %v1433_v54 = vadd.f32 0.0036580483, %v1432_v52 }
 0xa24   : > { %v1445_v56 = vmul.f32 %v1444_v53, %v1429_v45  ;;  %v1434_v58 = vmul.f32 %v1433_v54, %v1429_v45 }
 0xa26   : > { %v1446_v57 = vadd.f32 0.112945676, %v1445_v56  ;;  %v1435_v62 = vadd.f32 0.05243302, %v1434_v58 }
 0xa28   : > { %v1447_v60 = vmul.f32 %v1446_v57, %v1429_v45  ;;  %v1436_v1 = vmul.f32 %v1435_v62, %v1429_v45 }
 0xa2a   : > { %v1448_v61 = vadd.f32 0.4994258, %v1447_v60  ;;  %v1437_v3 = vadd.f32 0.18741608, %v1436_v1 }
 0xa2c   : > { %v1449_v63 = vmul.f32 %v1448_v61, %v1429_v45  ;;  %v1438_v6 = vmul.f32 %v1437_v3, %v1429_v45 }
 0xa2e   : > { %v1450_v0 = vadd.f32 1.0, %v1449_v63  ;;  %v1439_v10 = vadd.f32 1.1283791, %v1438_v6 }
 0xa30   : > { %2100 = vrcp.f32 %v1450_v0  ;;  %v1462_v9 = vand.u32 2147483648, %v1450_v0  ;;  %v1460_v12 = vand.u32 2147483647, %v1450_v0  ;;  %vm1456_vm13 = vweird.f32 %v1450_v0 }
 0xa31   : > { %v1440_v15 = vmul.f32 %v1439_v10, %v1427_v42 }
 0xa32   : > { %v1463_v14 = vor.u32 1.1754944e-38, %v1462_v9  ;;  %vm1461_vm15 = vcmp.eq.f32.partialorder %v1460_v12, 8.507059e+37 }
 0xa36   : > { %v2101_v5 = vpop.eup %2100 }
 0xa37   : > { %v1452_v7 = vmul.f32 %v2101_v5, %v1450_v0  ;;  %vm1457_vm12 = vweird.f32 %v2101_v5 }
 0xa38   : > { %vm1458_vm14 = vmor %vm1456_vm13, %vm1457_vm12 }
 0xa39   : > { %v1453_v8 = vsub.f32 1.0, %v1452_v7 }
 0xa3b   : > { %v1454_v11 = vmul.f32 %v2101_v5, %v1453_v8 }
 0xa3d   : > { %v1455_v13 = vadd.f32 %v2101_v5, %v1454_v11 }
 0xa3f   : > { %v1459_v4 = vsel %vm1458_vm14, %v2101_v5, %v1455_v13 }
 0xa40   : > { %v1464_v16 = vsel %vm1461_vm15, %v1463_v14, %v1459_v4 }
 0xa41   : > { %v1465_v17 = vmul.f32 %v1464_v16, %v1440_v15 }
 0xa43   : > { %v1938_v18 = vclamps-f32 %v1465_v17, 1.0 }
 0xa45   : > { %v1468_v21 = vadd.f32 1.0, %v1938_v18 }
 0xa47   : > { %v1469_v22 = vmul.f32 %v1468_v21, %v1426_v20 }
 0xa49   : > { %v1470_v23 = vpack.c.bf16 %v1469_v22, %v1469_v22 }
 0xa4b   : > { %1955 = vmatmul.msk.bf16.vlgmr.msra.gmra.mxu1 %vm1507_vm0, %v1470_v23 }
 0xac8   : > { %v1520_v25 = vpop.f32.mrf.mxu1 }
 0xac9   : > { %v1521_v26 = vadd.f32 %v2077_v24, %v1520_v25 }
 0xacb   : > { %v1524_v27 = vadd.f32 %v1521_v26, %v2511_v2 }
 0xacc   : > { %1529 = sbr.rel (%p1956_p1) target bundleno = 2770 (0xad2), region = 76 }
 0xacd   : > { %1525 = vst.msk [vmem:[#allocation2] sm:$0xff] %vm608_vm1, %v1524_v27 }
 0xad0   : > { %v1522_v28 = vpop.f32.mrf.mxu1 }
 0xad1   : > { %1530 = vst.msk [vmem:[%s553_s16] sm:$0xff] %vm608_vm1, %v1524_v27 }
 0xad2 PF: > { %s2654_s12 = sld [smem:[#allocation10_spill]]  ;;  %s1544_s28 = sshll.u32 %s553_s16, 4  ;;  %s1545_s28 = int_to_ptr.vmem [resolvable:$true] %s1544_s28 }
 0xad3   : > { %s2655_s25 = sld [smem:[#allocation7_spill]] }
 0xad4   : > { %s2657_s15 = sld [smem:[#allocation22_spill]] }
 0xad8   : > { %s1958_s21 = sshll.u32 %s2654_s12, 3 }
 0xad9   : > { %s2658_s3 = sand.u32 1, %s2655_s25  }
 0xada   : > { %s1542_s14 = scalar_lea.hbm %s2657_s15, %s1958_s21  ;;  %s1532_s26 = scalar_lea.sflag [#allocation4], %s2658_s3 }
 0xadb   : > { %s1546_s30 = sshll.u32 %s1542_s14, 4  ;;  %s2122_s0 = scalar_lea.hbm %s2657_s15, 16  ;;  %s1547_s30 = int_to_ptr.hbm [resolvable:$true] %s1546_s30 }
 0xadc   : > { %s2116_s17 = sshra.s32 %s1547_s30, 4  ;;  %s2117_s17 = int_to_ptr.hbm [resolvable:$true] %s2116_s17 }
 0xadd   : > { %s2118_s18 = scalar_lea.hbm %s2117_s17, 8  ;;  %p2123_p6 = scmp.lt.s32.totalorder %s2117_s17, %s2657_s15 }
 0xade   : > { %p2119_p2 = scmp.ne.s32.totalorder %s2117_s17, %s2118_s18  ;;  %p2124_p7 = scmp.lt.s32.totalorder %s2122_s0, %s2118_s18 }
 0xae0   : > { %p2120_p4 = pnand %p2119_p2, %p2313_p3  ;;  %p2125_p8 = por %p2124_p7, %p2123_p6 }
 0xae2   : > { %p2121_p5 = pneg %p2120_p4 }
 0xae4   : > { %p2126_p10 = pnand %p2125_p8, %p2121_p5 }
 0xae6   : > { %2129 = shalt.err (!%p2126_p10)
}
 0xae7   : > { %1999 = dma.vmem_to_hbm [thread:$0]  (%p2313_p3), %s1545_s28, 128, %s1547_s30, %s1532_s26  }
 0xae8 PF: > { %s2659_s29 = sld [smem:[#allocation13_spill]] }
 0xae9   : > { %s2660_s16 = sld [smem:[#allocation6_spill]] }
 0xaee   : > { %p2005_p11 = scmp.ge.s32.totalorder %s2659_s29, 2 }
 0xaef   : > { %s1558_s12 = sand.u32 1, %s2660_s16  }
 0xaf0   : > { %p2002_p12 = pnand %p2005_p11, %p2323_p9  ;;  %s1559_s25 = scalar_lea.sflag [#allocation4], %s1558_s12 }
 0xaf2   : > { %p2003_p13 = pneg %p2002_p12 }
 0xaf4   : > { %2163 = dma.done.wait (%p2003_p13), %s1559_s25, 128  }
 0xaf5   : > { %2165 = vsyncadd (%p2003_p13), %s1559_s25, 4294967168  ;;  %s25_s28 = sadd.s32 1, %s2659_s29   ;;  %s2662_s21 = sld [smem:[#allocation7_spill]] }
 0xaf6   : > { %p22_p0 = scmp.ge.s32.totalorder %s25_s28, 6   ;;  %s2663_s22 = sld [smem:[#allocation8_spill]] }
 0xaf7   : > { %s2664_s23 = sld [smem:[#allocation18_spill]] }
 0xaf8   : > { %s2665_s24 = sld [smem:[#allocation11_spill]]  ;;  %24 = sbr.rel (!%p22_p0) target bundleno = 10 (0xa), region = 158 }
 0xaf9   : > { %s2666_s25 = sld [smem:[#allocation12_spill]] }
 0xafa   : > { %s2667_s26 = sld [smem:[#allocation14_spill]] }
 0xafb   : > { %s2668_s27 = sld [smem:[#allocation16_spill]] }
 0xafd   :  { %1565 = vsyncpa [#allocation4], 1 }
 0xafe   :  { %1567 = vsyncpa [#allocation4 + $0x1], 1 }

</bundles_post_ra>
